<compile_context>
chip_gen: v5e
topology: v5e:2x2
jax: 0.10.0
libtpu: 0.0.40
codegen_flags: <defaults>
</compile_context>

<pallas_src>
import functools
import math

import jax
import jax.numpy as jnp
from jax.experimental import pallas as pl
from jax.experimental.pallas import tpu as pltpu

QUANTUM_DIM = 16
LN_EPS = 1e-5  # PyTorch nn.LayerNorm default


def _default_vmem_limit():
    # generation-aware scoped VMEM limit: ~48 MiB on 128-MiB parts (v5e/v6e),
    # ~36 MiB on 64-MiB parts (v7x).
    try:
        cap = pltpu.get_tpu_info().vmem_capacity_bytes
    except Exception:  # pragma: no cover - conservative fallback
        cap = 128 * 1024 * 1024
    return 48 * 1024 * 1024 if cap >= 100 * 1024 * 1024 else 36 * 1024 * 1024


VMEM_LIMIT = _default_vmem_limit()


def _pick_tile(n, target=256):
    """Largest multiple-of-8 divisor of n that is <= target (or n itself if small/prime)."""
    if n <= target:
        return n
    start = (target // 8) * 8
    for t in range(start, 7, -8):
        if n % t == 0:
            return t
    return n  # fallback: no tiling


# --------------------------------------------------------------------------------------
# Kernel A: fused projections + quantum paths, head-major outputs with appended probs.
# --------------------------------------------------------------------------------------
def _fusion_kernel(D, QD, nhead, interf_scale,
                   x_ref, wbig_ref, bbig_ref, meas_ref,
                   qe_ref, ke_ref, vh_ref):
    f32 = jnp.float32
    bf16 = jnp.bfloat16
    hd = D // nhead

    xb = x_ref[0]                                                       # (tS, D) bf16

    # single fused projection: (tS, 5D + 4*QD), f32 accumulation
    big = jnp.dot(xb, wbig_ref[...], preferred_element_type=f32) + bbig_ref[...]

    Q = big[:, 0 * D:1 * D]
    K = big[:, 1 * D:2 * D]
    V = big[:, 2 * D:3 * D]
    cq = jnp.tanh(big[:, 3 * D:4 * D])                                  # classical path (quantum_q)
    ck = jnp.tanh(big[:, 4 * D:5 * D])                                  # classical path (quantum_k)
    base = 5 * D
    er_q = big[:, base + 0 * QD: base + 1 * QD]                         # folded (sup@qw_r@ent)
    ei_q = big[:, base + 1 * QD: base + 2 * QD]
    er_k = big[:, base + 2 * QD: base + 3 * QD]
    ei_k = big[:, base + 3 * QD: base + 4 * QD]

    # |z|^2 measurement probabilities (f32)
    q_probs = er_q * er_q + ei_q * ei_q                                 # (tS, QD)
    k_probs = er_k * er_k + ei_k * ei_k

    q_out = jnp.dot(q_probs.astype(bf16), meas_ref[0], preferred_element_type=f32)  # (tS, D)
    k_out = jnp.dot(k_probs.astype(bf16), meas_ref[1], preferred_element_type=f32)

    fw_q = jax.nn.sigmoid(jnp.mean(q_probs, axis=-1, keepdims=True))    # (tS, 1)
    fw_k = jax.nn.sigmoid(jnp.mean(k_probs, axis=-1, keepdims=True))
    Qq = fw_q * q_out + (1.0 - fw_q) * cq
    Kq = fw_k * k_out + (1.0 - fw_k) * ck

    Qf = 0.7 * Q + 0.3 * Qq                                             # (tS, D) f32
    Kf = 0.7 * K + 0.3 * Kq

    # interference columns: c = sqrt(0.1*sqrt(hd)) so that after the common 1/sqrt(hd) score
    # scale in kernel B, the appended-column contraction contributes exactly 0.1*<q_probs,k_probs>
    qp_s = (q_probs * interf_scale).astype(bf16)                        # (tS, QD)
    kp_s = (k_probs * interf_scale).astype(bf16)

    # head-major stores (no XLA transpose round trip); probs appended to every head's q/k.
    for h in range(nhead):
        lo, hi = h * hd, (h + 1) * hd
        qe_ref[0, h, :, 0:hd] = Qf[:, lo:hi].astype(bf16)
        qe_ref[0, h, :, hd:hd + QD] = qp_s
        ke_ref[0, h, :, 0:hd] = Kf[:, lo:hi].astype(bf16)
        ke_ref[0, h, :, hd:hd + QD] = kp_s
        vh_ref[0, h] = V[:, lo:hi].astype(bf16)


# --------------------------------------------------------------------------------------
# Kernel B: q-tiled multi-head attention (interference fused into the contraction),
#           output projection accumulated over heads, residual + LayerNorm.
# --------------------------------------------------------------------------------------
def _attention_kernel(nhead, head_dim,
                      x_ref, qe_ref, ke_ref, vh_ref,
                      wo_ref, bo_ref, ln_g_ref, ln_b_ref,
                      out_ref, attn_ref):
    f32 = jnp.float32
    bf16 = jnp.bfloat16

    qe = qe_ref[0]                                                      # (H, tq, hd+QD) bf16
    ke = ke_ref[0]                                                      # (H, S,  hd+QD) bf16
    vh = vh_ref[0]                                                      # (H, S,  hd)    bf16

    inv_sqrt_hd = 1.0 / math.sqrt(head_dim)
    # QK/sqrt(hd) + 0.1*<q_probs,k_probs>  in a single contraction (interference columns fused)
    scores = jnp.einsum('hqd,hkd->hqk', qe, ke,
                        preferred_element_type=f32) * inv_sqrt_hd       # (H, tq, S)

    # max-stabilized softmax; exact reciprocal on the tiny (H, tq, 1) denominator so the
    # returned attention weights sum to 1.
    m = jnp.max(scores, axis=-1, keepdims=True)
    e = jnp.exp(scores - m)
    denom = jnp.sum(e, axis=-1, keepdims=True)
    w = e * (1.0 / denom)                                               # (H, tq, S) f32
    attn_ref[0] = w.astype(attn_ref.dtype)                              # lane-dense (H,tq,S) store

    attended = jnp.einsum('hqk,hkd->hqd', w.astype(bf16), vh,
                          preferred_element_type=f32).astype(bf16)      # (H, tq, hd)

    # output projection: accumulate per head into one (tq, D) f32 buffer
    # (no (H, tq, D) partial materialization).
    tq = attended.shape[1]
    D = out_ref.shape[-1]
    proj = jnp.zeros((tq, D), f32)
    for h in range(nhead):
        proj = proj + jnp.dot(attended[h], wo_ref[h], preferred_element_type=f32)
    proj = proj + bo_ref[...]

    # residual + LayerNorm (f32)
    y = proj + x_ref[0]
    mu = jnp.mean(y, axis=-1, keepdims=True)
    var = jnp.mean((y - mu) ** 2, axis=-1, keepdims=True)
    y_norm = (y - mu) * jax.lax.rsqrt(var + LN_EPS)
    out_ref[0] = (y_norm * ln_g_ref[...] + ln_b_ref[...]).astype(out_ref.dtype)


# --------------------------------------------------------------------------------------
# Wrapper
# --------------------------------------------------------------------------------------
@functools.partial(jax.jit, static_argnames=("nhead",))
def quantum_attention(x, params, *, nhead):
    B, S, D = x.shape
    assert D % nhead == 0, "d_model must be divisible by nhead"
    hd = D // nhead
    QD = params["sup"].shape[-1]
    f32 = jnp.float32
    bf16 = jnp.bfloat16

    tS = _pick_tile(S, 256)   # kernel A row tile
    tq = _pick_tile(S, 256)   # kernel B query tile

    # ---- wrapper-side weight folding (tiny XLA ops, off the kernel critical path) ----
    sup = params["sup"].astype(f32)                                     # (2, D, QD)
    ent = params["ent"].astype(f32)                                     # (2, QD, QD)
    m_r = jnp.einsum("idq,iqr,irs->ids", sup, params["qw_r"].astype(f32), ent)   # (2, D, QD)
    m_i = jnp.einsum("idq,iqr,irs->ids", sup, params["qw_i"].astype(f32), ent)   # (2, D, QD)

    w_big = jnp.concatenate(
        [params["wq"], params["wk"], params["wv"],
         params["qlin_w"][0], params["qlin_w"][1],
         m_r[0], m_i[0], m_r[1], m_i[1]], axis=1).astype(bf16)          # (D, 5D + 4QD)
    b_big = jnp.concatenate(
        [params["bq"], params["bk"], params["bv"],
         params["qlin_b"][0], params["qlin_b"][1],
         jnp.zeros((1, 4 * QD), f32)], axis=1).astype(f32)              # (1, 5D + 4QD)
    meas = params["meas"].astype(bf16)                                  # (2, QD, D)
    wtot = 5 * D + 4 * QD

    x_bf16 = x.astype(bf16)                                             # halve kernel-A input DMA
    interf_scale = math.sqrt(0.1 * math.sqrt(hd))

    fusion_cost = pl.CostEstimate(
        flops=int(2 * B * S * D * wtot + 4 * B * S * QD * D),
        transcendentals=int(B * S * (2 * D + 2)),
        bytes_accessed=int(x_bf16.size * 2 + w_big.size * 2 + b_big.size * 4 + meas.size * 2
                           + 2 * B * nhead * S * (hd + QD) * 2 + B * S * D * 2),
    )

    qe, ke, vh = pl.pallas_call(
        functools.partial(_fusion_kernel, D, QD, nhead, interf_scale),
        grid=(B, S // tS),
        in_specs=[
            pl.BlockSpec((1, tS, D), lambda b, s: (b, s, 0)),
            pl.BlockSpec((D, wtot), lambda b, s: (0, 0)),
            pl.BlockSpec((1, wtot), lambda b, s: (0, 0)),
            pl.BlockSpec((2, QD, D), lambda b, s: (0, 0, 0)),
        ],
        out_specs=(
            pl.BlockSpec((1, nhead, tS, hd + QD), lambda b, s: (b, 0, s, 0)),
            pl.BlockSpec((1, nhead, tS, hd + QD), lambda b, s: (b, 0, s, 0)),
            pl.BlockSpec((1, nhead, tS, hd), lambda b, s: (b, 0, s, 0)),
        ),
        out_shape=(
            jax.ShapeDtypeStruct((B, nhead, S, hd + QD), bf16),
            jax.ShapeDtypeStruct((B, nhead, S, hd + QD), bf16),
            jax.ShapeDtypeStruct((B, nhead, S, hd), bf16),
        ),
        compiler_params=pltpu.CompilerParams(
            dimension_semantics=("parallel", "parallel"),
            vmem_limit_bytes=VMEM_LIMIT),
        cost_estimate=fusion_cost,
    )(x_bf16, w_big, b_big, meas)

    wo_h = params["wo"].reshape(nhead, hd, D).astype(bf16)              # (H, hd, D)
    bo = params["bo"].astype(f32)
    ln_g = params["ln_g"].astype(f32)
    ln_b = params["ln_b"].astype(f32)

    attn_cost = pl.CostEstimate(
        flops=int(2 * B * nhead * S * S * (2 * hd + QD) + 2 * B * S * D * D),
        transcendentals=int(B * nhead * S * S),
        bytes_accessed=int(x.size * 4 + 2 * B * nhead * S * (hd + QD) * 2
                           + B * nhead * S * hd * 2 + wo_h.size * 2
                           + B * S * D * 4 + B * nhead * S * S * 4),
    )

    out, attn = pl.pallas_call(
        functools.partial(_attention_kernel, nhead, hd),
        grid=(B, S // tq),
        in_specs=[
            pl.BlockSpec((1, tq, D), lambda b, q: (b, q, 0)),
            pl.BlockSpec((1, nhead, tq, hd + QD), lambda b, q: (b, 0, q, 0)),
            pl.BlockSpec((1, nhead, S, hd + QD), lambda b, q: (b, 0, 0, 0)),
            pl.BlockSpec((1, nhead, S, hd), lambda b, q: (b, 0, 0, 0)),
            pl.BlockSpec((nhead, hd, D), lambda b, q: (0, 0, 0)),
            pl.BlockSpec((1, D), lambda b, q: (0, 0)),
            pl.BlockSpec((1, D), lambda b, q: (0, 0)),
            pl.BlockSpec((1, D), lambda b, q: (0, 0)),
        ],
        out_specs=(
            pl.BlockSpec((1, tq, D), lambda b, q: (b, q, 0)),
            pl.BlockSpec((1, nhead, tq, S), lambda b, q: (b, 0, q, 0)),
        ),
        out_shape=(
            jax.ShapeDtypeStruct((B, S, D), f32),
            jax.ShapeDtypeStruct((B, nhead, S, S), f32),
        ),
        compiler_params=pltpu.CompilerParams(
            dimension_semantics=("parallel", "parallel"),
            vmem_limit_bytes=VMEM_LIMIT),
        cost_estimate=attn_cost,
    )(x, qe, ke, vh, wo_h, bo, ln_g, ln_b)

    return out, attn


def init_params(key, d_model, qdim=QUANTUM_DIM):
    keys = iter(jax.random.split(key, 32))

    def rnd(shape, scale):
        return (scale * jax.random.normal(next(keys), shape)).astype(jnp.float32)

    sd = 1.0 / math.sqrt(d_model)
    sq = 1.0 / math.sqrt(qdim)
    return dict(
        # nn.Linear weights pre-transposed to (in, out); biases as (1, out)
        wq=rnd((d_model, d_model), sd), bq=rnd((1, d_model), sd),
        wk=rnd((d_model, d_model), sd), bk=rnd((1, d_model), sd),
        wv=rnd((d_model, d_model), sd), bv=rnd((1, d_model), sd),
        wo=rnd((d_model, d_model), sd), bo=rnd((1, d_model), sd),
        ln_g=jnp.ones((1, d_model), jnp.float32),
        ln_b=jnp.zeros((1, d_model), jnp.float32),
        # QuantumInspiredLayer params stacked: index 0 = quantum_q, 1 = quantum_k
        qlin_w=rnd((2, d_model, d_model), sd),
        qlin_b=rnd((2, 1, d_model), sd),
        sup=rnd((2, d_model, qdim), sd),
        qw_r=rnd((2, qdim, qdim), sq),
        qw_i=rnd((2, qdim, qdim), sq),
        ent=rnd((2, qdim, qdim), sq),
        meas=rnd((2, qdim, d_model), sq),
    )


if __name__ == "__main__":
    B, S, D, H = 2, 8, 32, 4
    key = jax.random.PRNGKey(0)
    kx, kp = jax.random.split(key)
    x = jax.random.normal(kx, (B, S, D), dtype=jnp.float32)
    params = init_params(kp, D)

    out, attn = quantum_attention(x, params, nhead=H)
    jax.block_until_ready((out, attn))

    assert out.shape == (B, S, D), out.shape
    assert attn.shape == (B, H, S, S), attn.shape
    assert bool(jnp.all(jnp.isfinite(out))) and bool(jnp.all(jnp.isfinite(attn)))
    # softmax rows should sum to ~1 (exact reciprocal used for the stored weights)
    assert bool(jnp.allclose(jnp.sum(attn, axis=-1), 1.0, atol=1e-3))
    print("KERNEL_OK")
</pallas_src>

<mosaic_0001>
module attributes {stable_mosaic.version = 11 : i64} {
  func.func @_attention_kernel(%arg0: i32, %arg1: i32, %arg2: memref<1x8x32xf32, #tpu.memory_space<vmem>>, %arg3: memref<1x4x8x24xbf16, #tpu.memory_space<vmem>>, %arg4: memref<1x4x8x24xbf16, #tpu.memory_space<vmem>>, %arg5: memref<1x4x8x8xbf16, #tpu.memory_space<vmem>>, %arg6: memref<4x8x32xbf16, #tpu.memory_space<vmem>>, %arg7: memref<1x32xf32, #tpu.memory_space<vmem>>, %arg8: memref<1x32xf32, #tpu.memory_space<vmem>>, %arg9: memref<1x32xf32, #tpu.memory_space<vmem>>, %arg10: memref<1x8x32xf32, #tpu.memory_space<vmem>>, %arg11: memref<1x4x8x8xf32, #tpu.memory_space<vmem>>) attributes {dimension_semantics = [#tpu.dimension_semantics<parallel>, #tpu.dimension_semantics<parallel>], iteration_bounds = array<i64: 2, 1>, scalar_prefetch = 0 : i64, scratch_operands = 0 : i64, tpu.core_type = #tpu.core_type<tc>, window_params = [{transform_indices = @transform_0, window_bounds = array<i64: 1, 8, 32>}, {transform_indices = @transform_1, window_bounds = array<i64: 1, 4, 8, 24>}, {transform_indices = @transform_2, window_bounds = array<i64: 1, 4, 8, 24>}, {transform_indices = @transform_3, window_bounds = array<i64: 1, 4, 8, 8>}, {pipeline_mode = #tpu.pipeline_mode<synchronous>, transform_indices = @transform_4, window_bounds = array<i64: 4, 8, 32>}, {pipeline_mode = #tpu.pipeline_mode<synchronous>, transform_indices = @transform_5, window_bounds = array<i64: 1, 32>}, {pipeline_mode = #tpu.pipeline_mode<synchronous>, transform_indices = @transform_6, window_bounds = array<i64: 1, 32>}, {pipeline_mode = #tpu.pipeline_mode<synchronous>, transform_indices = @transform_7, window_bounds = array<i64: 1, 32>}, {transform_indices = @transform_8, window_bounds = array<i64: 1, 8, 32>}, {transform_indices = @transform_9, window_bounds = array<i64: 1, 4, 8, 8>}]} {
    %c0 = arith.constant 0 : index
    %c0_0 = arith.constant 0 : index
    %c0_1 = arith.constant 0 : index
    %c0_2 = arith.constant 0 : index
    %0 = vector.load %arg3[%c0, %c0_0, %c0_1, %c0_2] : memref<1x4x8x24xbf16, #tpu.memory_space<vmem>>, vector<1x4x8x24xbf16>
    %1 = vector.shape_cast %0 : vector<1x4x8x24xbf16> to vector<4x8x24xbf16>
    %c0_3 = arith.constant 0 : index
    %c0_4 = arith.constant 0 : index
    %c0_5 = arith.constant 0 : index
    %c0_6 = arith.constant 0 : index
    %2 = vector.load %arg4[%c0_3, %c0_4, %c0_5, %c0_6] : memref<1x4x8x24xbf16, #tpu.memory_space<vmem>>, vector<1x4x8x24xbf16>
    %3 = vector.shape_cast %2 : vector<1x4x8x24xbf16> to vector<4x8x24xbf16>
    %c0_7 = arith.constant 0 : index
    %c0_8 = arith.constant 0 : index
    %c0_9 = arith.constant 0 : index
    %c0_10 = arith.constant 0 : index
    %4 = vector.load %arg5[%c0_7, %c0_8, %c0_9, %c0_10] : memref<1x4x8x8xbf16, #tpu.memory_space<vmem>>, vector<1x4x8x8xbf16>
    %5 = vector.shape_cast %4 : vector<1x4x8x8xbf16> to vector<4x8x8xbf16>
    "tpu.trace_start"() <{level = 10 : i32, message = "hqd,hkd->hqk"}> : () -> ()
    %cst = arith.constant dense<0.000000e+00> : vector<4x8x8xf32>
    %6 = tpu.matmul %1, %3, %cst {dimension_numbers = #tpu.dot_dimension_numbers<[2], [2], [1], [1], [0, 0, 0, 1, 1, 1], [0], [0]>} : vector<4x8x24xbf16>, vector<4x8x24xbf16>, vector<4x8x8xf32> -> vector<4x8x8xf32>
    "tpu.trace_stop"() : () -> ()
    %cst_11 = arith.constant 0.353553385 : f32
    %7 = vector.broadcast %cst_11 : f32 to vector<4x8x8xf32>
    %8 = arith.mulf %6, %7 : vector<4x8x8xf32>
    %cst_12 = arith.constant dense<0xFF800000> : vector<4x8xf32>
    %9 = vector.multi_reduction <maximumf>, %8, %cst_12 [2] : vector<4x8x8xf32> to vector<4x8xf32>
    %10 = vector.shape_cast %9 : vector<4x8xf32> to vector<4x8x1xf32>
    %11 = vector.broadcast %10 : vector<4x8x1xf32> to vector<4x8x8xf32>
    %12 = arith.subf %8, %11 : vector<4x8x8xf32>
    %13 = math.exp %12 : vector<4x8x8xf32>
    %cst_13 = arith.constant dense<0.000000e+00> : vector<4x8xf32>
    %14 = vector.multi_reduction <add>, %13, %cst_13 [2] : vector<4x8x8xf32> to vector<4x8xf32>
    %15 = vector.shape_cast %14 : vector<4x8xf32> to vector<4x8x1xf32>
    %cst_14 = arith.constant 1.000000e+00 : f32
    %16 = vector.broadcast %cst_14 : f32 to vector<4x8x1xf32>
    %17 = arith.divf %16, %15 : vector<4x8x1xf32>
    %18 = vector.broadcast %17 : vector<4x8x1xf32> to vector<4x8x8xf32>
    %19 = arith.mulf %13, %18 : vector<4x8x8xf32>
    %c0_15 = arith.constant 0 : index
    %c0_16 = arith.constant 0 : index
    %c0_17 = arith.constant 0 : index
    %c0_18 = arith.constant 0 : index
    %20 = vector.load %arg11[%c0_15, %c0_16, %c0_17, %c0_18] : memref<1x4x8x8xf32, #tpu.memory_space<vmem>>, vector<1x4x8x8xf32>
    %21 = vector.shape_cast %20 : vector<1x4x8x8xf32> to vector<4x8x8xf32>
    %22 = vector.shape_cast %19 : vector<4x8x8xf32> to vector<1x4x8x8xf32>
    tpu.vector_store %arg11[%c0_15, %c0_16, %c0_17, %c0_18], %22 {strides = array<i32>} : memref<1x4x8x8xf32, #tpu.memory_space<vmem>>, vector<1x4x8x8xf32>,
    %23 = arith.truncf %19 : vector<4x8x8xf32> to vector<4x8x8xbf16>
    "tpu.trace_start"() <{level = 10 : i32, message = "hqk,hkd->hqd"}> : () -> ()
    %cst_19 = arith.constant dense<0.000000e+00> : vector<4x8x8xf32>
    %24 = tpu.matmul %23, %5, %cst_19 {dimension_numbers = #tpu.dot_dimension_numbers<[2], [1], [1], [2], [0, 0, 0, 1, 1, 2], [0], [0]>} : vector<4x8x8xbf16>, vector<4x8x8xbf16>, vector<4x8x8xf32> -> vector<4x8x8xf32>
    "tpu.trace_stop"() : () -> ()
    %25 = arith.truncf %24 : vector<4x8x8xf32> to vector<4x8x8xbf16>
    %cst_20 = arith.constant 0.000000e+00 : f32
    %26 = vector.broadcast %cst_20 : f32 to vector<8x32xf32>
    %27 = vector.extract_strided_slice %25 {offsets = [0, 0, 0], sizes = [1, 8, 8], strides = [1, 1, 1]} : vector<4x8x8xbf16> to vector<1x8x8xbf16>
    %28 = vector.shape_cast %27 : vector<1x8x8xbf16> to vector<8x8xbf16>
    %c0_21 = arith.constant 0 : index
    %c0_22 = arith.constant 0 : index
    %c0_23 = arith.constant 0 : index
    %29 = vector.load %arg6[%c0_21, %c0_22, %c0_23] : memref<4x8x32xbf16, #tpu.memory_space<vmem>>, vector<1x8x32xbf16>
    %30 = vector.shape_cast %29 : vector<1x8x32xbf16> to vector<8x32xbf16>
    %cst_24 = arith.constant dense<0.000000e+00> : vector<8x32xf32>
    %31 = tpu.matmul %28, %30, %cst_24 {dimension_numbers = #tpu.dot_dimension_numbers<[1], [0], [0], [1], [0, 0, 1, 1], [], []>} : vector<8x8xbf16>, vector<8x32xbf16>, vector<8x32xf32> -> vector<8x32xf32>
    %32 = arith.addf %26, %31 : vector<8x32xf32>
    %33 = vector.extract_strided_slice %25 {offsets = [1, 0, 0], sizes = [1, 8, 8], strides = [1, 1, 1]} : vector<4x8x8xbf16> to vector<1x8x8xbf16>
    %34 = vector.shape_cast %33 : vector<1x8x8xbf16> to vector<8x8xbf16>
    %c1 = arith.constant 1 : index
    %c0_25 = arith.constant 0 : index
    %c0_26 = arith.constant 0 : index
    %35 = vector.load %arg6[%c1, %c0_25, %c0_26] : memref<4x8x32xbf16, #tpu.memory_space<vmem>>, vector<1x8x32xbf16>
    %36 = vector.shape_cast %35 : vector<1x8x32xbf16> to vector<8x32xbf16>
    %cst_27 = arith.constant dense<0.000000e+00> : vector<8x32xf32>
    %37 = tpu.matmul %34, %36, %cst_27 {dimension_numbers = #tpu.dot_dimension_numbers<[1], [0], [0], [1], [0, 0, 1, 1], [], []>} : vector<8x8xbf16>, vector<8x32xbf16>, vector<8x32xf32> -> vector<8x32xf32>
    %38 = arith.addf %32, %37 : vector<8x32xf32>
    %39 = vector.extract_strided_slice %25 {offsets = [2, 0, 0], sizes = [1, 8, 8], strides = [1, 1, 1]} : vector<4x8x8xbf16> to vector<1x8x8xbf16>
    %40 = vector.shape_cast %39 : vector<1x8x8xbf16> to vector<8x8xbf16>
    %c2 = arith.constant 2 : index
    %c0_28 = arith.constant 0 : index
    %c0_29 = arith.constant 0 : index
    %41 = vector.load %arg6[%c2, %c0_28, %c0_29] : memref<4x8x32xbf16, #tpu.memory_space<vmem>>, vector<1x8x32xbf16>
    %42 = vector.shape_cast %41 : vector<1x8x32xbf16> to vector<8x32xbf16>
    %cst_30 = arith.constant dense<0.000000e+00> : vector<8x32xf32>
    %43 = tpu.matmul %40, %42, %cst_30 {dimension_numbers = #tpu.dot_dimension_numbers<[1], [0], [0], [1], [0, 0, 1, 1], [], []>} : vector<8x8xbf16>, vector<8x32xbf16>, vector<8x32xf32> -> vector<8x32xf32>
    %44 = arith.addf %38, %43 : vector<8x32xf32>
    %45 = vector.extract_strided_slice %25 {offsets = [3, 0, 0], sizes = [1, 8, 8], strides = [1, 1, 1]} : vector<4x8x8xbf16> to vector<1x8x8xbf16>
    %46 = vector.shape_cast %45 : vector<1x8x8xbf16> to vector<8x8xbf16>
    %c3 = arith.constant 3 : index
    %c0_31 = arith.constant 0 : index
    %c0_32 = arith.constant 0 : index
    %47 = vector.load %arg6[%c3, %c0_31, %c0_32] : memref<4x8x32xbf16, #tpu.memory_space<vmem>>, vector<1x8x32xbf16>
    %48 = vector.shape_cast %47 : vector<1x8x32xbf16> to vector<8x32xbf16>
    %cst_33 = arith.constant dense<0.000000e+00> : vector<8x32xf32>
    %49 = tpu.matmul %46, %48, %cst_33 {dimension_numbers = #tpu.dot_dimension_numbers<[1], [0], [0], [1], [0, 0, 1, 1], [], []>} : vector<8x8xbf16>, vector<8x32xbf16>, vector<8x32xf32> -> vector<8x32xf32>
    %50 = arith.addf %44, %49 : vector<8x32xf32>
    %c0_34 = arith.constant 0 : index
    %c0_35 = arith.constant 0 : index
    %51 = vector.load %arg7[%c0_34, %c0_35] : memref<1x32xf32, #tpu.memory_space<vmem>>, vector<1x32xf32>
    %52 = vector.broadcast %51 : vector<1x32xf32> to vector<8x32xf32>
    %53 = arith.addf %50, %52 : vector<8x32xf32>
    %c0_36 = arith.constant 0 : index
    %c0_37 = arith.constant 0 : index
    %c0_38 = arith.constant 0 : index
    %54 = vector.load %arg2[%c0_36, %c0_37, %c0_38] : memref<1x8x32xf32, #tpu.memory_space<vmem>>, vector<1x8x32xf32>
    %55 = vector.shape_cast %54 : vector<1x8x32xf32> to vector<8x32xf32>
    %56 = arith.addf %53, %55 : vector<8x32xf32>
    %cst_39 = arith.constant dense<0.000000e+00> : vector<8xf32>
    %57 = vector.multi_reduction <add>, %56, %cst_39 [1] : vector<8x32xf32> to vector<8xf32>
    %58 = vector.shape_cast %57 : vector<8xf32> to vector<8x1xf32>
    %cst_40 = arith.constant 3.200000e+01 : f32
    %59 = vector.broadcast %cst_40 : f32 to vector<8x1xf32>
    %60 = arith.divf %58, %59 : vector<8x1xf32>
    %61 = vector.broadcast %60 : vector<8x1xf32> to vector<8x32xf32>
    %62 = arith.subf %56, %61 : vector<8x32xf32>
    %63 = arith.mulf %62, %62 : vector<8x32xf32>
    %cst_41 = arith.constant dense<0.000000e+00> : vector<8xf32>
    %64 = vector.multi_reduction <add>, %63, %cst_41 [1] : vector<8x32xf32> to vector<8xf32>
    %65 = vector.shape_cast %64 : vector<8xf32> to vector<8x1xf32>
    %cst_42 = arith.constant 3.200000e+01 : f32
    %66 = vector.broadcast %cst_42 : f32 to vector<8x1xf32>
    %67 = arith.divf %65, %66 : vector<8x1xf32>
    %68 = vector.broadcast %60 : vector<8x1xf32> to vector<8x32xf32>
    %69 = arith.subf %56, %68 : vector<8x32xf32>
    %cst_43 = arith.constant 9.99999974E-6 : f32
    %70 = vector.broadcast %cst_43 : f32 to vector<8x1xf32>
    %71 = arith.addf %67, %70 : vector<8x1xf32>
    %72 = math.rsqrt %71 : vector<8x1xf32>
    %73 = vector.broadcast %72 : vector<8x1xf32> to vector<8x32xf32>
    %74 = arith.mulf %69, %73 : vector<8x32xf32>
    %c0_44 = arith.constant 0 : index
    %c0_45 = arith.constant 0 : index
    %75 = vector.load %arg8[%c0_44, %c0_45] : memref<1x32xf32, #tpu.memory_space<vmem>>, vector<1x32xf32>
    %76 = vector.broadcast %75 : vector<1x32xf32> to vector<8x32xf32>
    %77 = arith.mulf %74, %76 : vector<8x32xf32>
    %c0_46 = arith.constant 0 : index
    %c0_47 = arith.constant 0 : index
    %78 = vector.load %arg9[%c0_46, %c0_47] : memref<1x32xf32, #tpu.memory_space<vmem>>, vector<1x32xf32>
    %79 = vector.broadcast %78 : vector<1x32xf32> to vector<8x32xf32>
    %80 = arith.addf %77, %79 : vector<8x32xf32>
    %c0_48 = arith.constant 0 : index
    %c0_49 = arith.constant 0 : index
    %c0_50 = arith.constant 0 : index
    %81 = vector.load %arg10[%c0_48, %c0_49, %c0_50] : memref<1x8x32xf32, #tpu.memory_space<vmem>>, vector<1x8x32xf32>
    %82 = vector.shape_cast %81 : vector<1x8x32xf32> to vector<8x32xf32>
    %83 = vector.shape_cast %80 : vector<8x32xf32> to vector<1x8x32xf32>
    tpu.vector_store %arg10[%c0_48, %c0_49, %c0_50], %83 {strides = array<i32>} : memref<1x8x32xf32, #tpu.memory_space<vmem>>, vector<1x8x32xf32>,
    return
  }
  func.func @transform_0(%arg0: i32, %arg1: i32) -> (i32, i32, i32) {
    %c0_i32 = arith.constant 0 : i32
    %c0_i32_0 = arith.constant 0 : i32
    return %arg0, %arg1, %c0_i32 : i32, i32, i32
  }
  func.func @transform_1(%arg0: i32, %arg1: i32) -> (i32, i32, i32, i32) {
    %c0_i32 = arith.constant 0 : i32
    %c0_i32_0 = arith.constant 0 : i32
    %c0_i32_1 = arith.constant 0 : i32
    return %arg0, %c0_i32, %arg1, %c0_i32_0 : i32, i32, i32, i32
  }
  func.func @transform_2(%arg0: i32, %arg1: i32) -> (i32, i32, i32, i32) {
    %c0_i32 = arith.constant 0 : i32
    %c0_i32_0 = arith.constant 0 : i32
    %c0_i32_1 = arith.constant 0 : i32
    %c0_i32_2 = arith.constant 0 : i32
    return %arg0, %c0_i32, %c0_i32_0, %c0_i32_1 : i32, i32, i32, i32
  }
  func.func @transform_3(%arg0: i32, %arg1: i32) -> (i32, i32, i32, i32) {
    %c0_i32 = arith.constant 0 : i32
    %c0_i32_0 = arith.constant 0 : i32
    %c0_i32_1 = arith.constant 0 : i32
    %c0_i32_2 = arith.constant 0 : i32
    return %arg0, %c0_i32, %c0_i32_0, %c0_i32_1 : i32, i32, i32, i32
  }
  func.func @transform_4(%arg0: i32, %arg1: i32) -> (i32, i32, i32) {
    %c0_i32 = arith.constant 0 : i32
    %c0_i32_0 = arith.constant 0 : i32
    %c0_i32_1 = arith.constant 0 : i32
    %c0_i32_2 = arith.constant 0 : i32
    return %c0_i32, %c0_i32_0, %c0_i32_1 : i32, i32, i32
  }
  func.func @transform_5(%arg0: i32, %arg1: i32) -> (i32, i32) {
    %c0_i32 = arith.constant 0 : i32
    %c0_i32_0 = arith.constant 0 : i32
    %c0_i32_1 = arith.constant 0 : i32
    return %c0_i32, %c0_i32_0 : i32, i32
  }
  func.func @transform_6(%arg0: i32, %arg1: i32) -> (i32, i32) {
    %c0_i32 = arith.constant 0 : i32
    %c0_i32_0 = arith.constant 0 : i32
    %c0_i32_1 = arith.constant 0 : i32
    return %c0_i32, %c0_i32_0 : i32, i32
  }
  func.func @transform_7(%arg0: i32, %arg1: i32) -> (i32, i32) {
    %c0_i32 = arith.constant 0 : i32
    %c0_i32_0 = arith.constant 0 : i32
    %c0_i32_1 = arith.constant 0 : i32
    return %c0_i32, %c0_i32_0 : i32, i32
  }
  func.func @transform_8(%arg0: i32, %arg1: i32) -> (i32, i32, i32) {
    %c0_i32 = arith.constant 0 : i32
    %c0_i32_0 = arith.constant 0 : i32
    return %arg0, %arg1, %c0_i32 : i32, i32, i32
  }
  func.func @transform_9(%arg0: i32, %arg1: i32) -> (i32, i32, i32, i32) {
    %c0_i32 = arith.constant 0 : i32
    %c0_i32_0 = arith.constant 0 : i32
    %c0_i32_1 = arith.constant 0 : i32
    return %arg0, %c0_i32, %arg1, %c0_i32_0 : i32, i32, i32, i32
  }
}

module attributes {stable_mosaic.version = 11 : i64} {
  func.func @_fusion_kernel(%arg0: i32, %arg1: i32, %arg2: memref<1x8x32xbf16, #tpu.memory_space<vmem>>, %arg3: memref<32x224xbf16, #tpu.memory_space<vmem>>, %arg4: memref<1x224xf32, #tpu.memory_space<vmem>>, %arg5: memref<2x16x32xbf16, #tpu.memory_space<vmem>>, %arg6: memref<1x4x8x24xbf16, #tpu.memory_space<vmem>>, %arg7: memref<1x4x8x24xbf16, #tpu.memory_space<vmem>>, %arg8: memref<1x4x8x8xbf16, #tpu.memory_space<vmem>>) attributes {dimension_semantics = [#tpu.dimension_semantics<parallel>, #tpu.dimension_semantics<parallel>], iteration_bounds = array<i64: 2, 1>, scalar_prefetch = 0 : i64, scratch_operands = 0 : i64, tpu.core_type = #tpu.core_type<tc>, window_params = [{transform_indices = @transform_0, window_bounds = array<i64: 1, 8, 32>}, {pipeline_mode = #tpu.pipeline_mode<synchronous>, transform_indices = @transform_1, window_bounds = array<i64: 32, 224>}, {pipeline_mode = #tpu.pipeline_mode<synchronous>, transform_indices = @transform_2, window_bounds = array<i64: 1, 224>}, {pipeline_mode = #tpu.pipeline_mode<synchronous>, transform_indices = @transform_3, window_bounds = array<i64: 2, 16, 32>}, {transform_indices = @transform_4, window_bounds = array<i64: 1, 4, 8, 24>}, {transform_indices = @transform_5, window_bounds = array<i64: 1, 4, 8, 24>}, {transform_indices = @transform_6, window_bounds = array<i64: 1, 4, 8, 8>}]} {
    %c0 = arith.constant 0 : index
    %c0_0 = arith.constant 0 : index
    %c0_1 = arith.constant 0 : index
    %0 = vector.load %arg2[%c0, %c0_0, %c0_1] : memref<1x8x32xbf16, #tpu.memory_space<vmem>>, vector<1x8x32xbf16>
    %1 = vector.shape_cast %0 : vector<1x8x32xbf16> to vector<8x32xbf16>
    %c0_2 = arith.constant 0 : index
    %c0_3 = arith.constant 0 : index
    %2 = vector.load %arg3[%c0_2, %c0_3] : memref<32x224xbf16, #tpu.memory_space<vmem>>, vector<32x224xbf16>
    %cst = arith.constant dense<0.000000e+00> : vector<8x224xf32>
    %3 = tpu.matmul %1, %2, %cst {dimension_numbers = #tpu.dot_dimension_numbers<[1], [0], [0], [1], [0, 0, 1, 1], [], []>} : vector<8x32xbf16>, vector<32x224xbf16>, vector<8x224xf32> -> vector<8x224xf32>
    %c0_4 = arith.constant 0 : index
    %c0_5 = arith.constant 0 : index
    %4 = vector.load %arg4[%c0_4, %c0_5] : memref<1x224xf32, #tpu.memory_space<vmem>>, vector<1x224xf32>
    %5 = vector.broadcast %4 : vector<1x224xf32> to vector<8x224xf32>
    %6 = arith.addf %3, %5 : vector<8x224xf32>
    %7 = vector.extract_strided_slice %6 {offsets = [0, 0], sizes = [8, 32], strides = [1, 1]} : vector<8x224xf32> to vector<8x32xf32>
    %8 = vector.extract_strided_slice %6 {offsets = [0, 32], sizes = [8, 32], strides = [1, 1]} : vector<8x224xf32> to vector<8x32xf32>
    %9 = vector.extract_strided_slice %6 {offsets = [0, 64], sizes = [8, 32], strides = [1, 1]} : vector<8x224xf32> to vector<8x32xf32>
    %10 = vector.extract_strided_slice %6 {offsets = [0, 96], sizes = [8, 32], strides = [1, 1]} : vector<8x224xf32> to vector<8x32xf32>
    %11 = math.tanh %10 : vector<8x32xf32>
    %12 = vector.extract_strided_slice %6 {offsets = [0, 128], sizes = [8, 32], strides = [1, 1]} : vector<8x224xf32> to vector<8x32xf32>
    %13 = math.tanh %12 : vector<8x32xf32>
    %14 = vector.extract_strided_slice %6 {offsets = [0, 160], sizes = [8, 16], strides = [1, 1]} : vector<8x224xf32> to vector<8x16xf32>
    %15 = vector.extract_strided_slice %6 {offsets = [0, 176], sizes = [8, 16], strides = [1, 1]} : vector<8x224xf32> to vector<8x16xf32>
    %16 = vector.extract_strided_slice %6 {offsets = [0, 192], sizes = [8, 16], strides = [1, 1]} : vector<8x224xf32> to vector<8x16xf32>
    %17 = vector.extract_strided_slice %6 {offsets = [0, 208], sizes = [8, 16], strides = [1, 1]} : vector<8x224xf32> to vector<8x16xf32>
    %18 = arith.mulf %14, %14 : vector<8x16xf32>
    %19 = arith.mulf %15, %15 : vector<8x16xf32>
    %20 = arith.addf %18, %19 : vector<8x16xf32>
    %21 = arith.mulf %16, %16 : vector<8x16xf32>
    %22 = arith.mulf %17, %17 : vector<8x16xf32>
    %23 = arith.addf %21, %22 : vector<8x16xf32>
    %24 = arith.truncf %20 : vector<8x16xf32> to vector<8x16xbf16>
    %c0_6 = arith.constant 0 : index
    %c0_7 = arith.constant 0 : index
    %c0_8 = arith.constant 0 : index
    %25 = vector.load %arg5[%c0_6, %c0_7, %c0_8] : memref<2x16x32xbf16, #tpu.memory_space<vmem>>, vector<1x16x32xbf16>
    %26 = vector.shape_cast %25 : vector<1x16x32xbf16> to vector<16x32xbf16>
    %cst_9 = arith.constant dense<0.000000e+00> : vector<8x32xf32>
    %27 = tpu.matmul %24, %26, %cst_9 {dimension_numbers = #tpu.dot_dimension_numbers<[1], [0], [0], [1], [0, 0, 1, 1], [], []>} : vector<8x16xbf16>, vector<16x32xbf16>, vector<8x32xf32> -> vector<8x32xf32>
    %28 = arith.truncf %23 : vector<8x16xf32> to vector<8x16xbf16>
    %c1 = arith.constant 1 : index
    %c0_10 = arith.constant 0 : index
    %c0_11 = arith.constant 0 : index
    %29 = vector.load %arg5[%c1, %c0_10, %c0_11] : memref<2x16x32xbf16, #tpu.memory_space<vmem>>, vector<1x16x32xbf16>
    %30 = vector.shape_cast %29 : vector<1x16x32xbf16> to vector<16x32xbf16>
    %cst_12 = arith.constant dense<0.000000e+00> : vector<8x32xf32>
    %31 = tpu.matmul %28, %30, %cst_12 {dimension_numbers = #tpu.dot_dimension_numbers<[1], [0], [0], [1], [0, 0, 1, 1], [], []>} : vector<8x16xbf16>, vector<16x32xbf16>, vector<8x32xf32> -> vector<8x32xf32>
    %cst_13 = arith.constant dense<0.000000e+00> : vector<8xf32>
    %32 = vector.multi_reduction <add>, %20, %cst_13 [1] : vector<8x16xf32> to vector<8xf32>
    %33 = vector.shape_cast %32 : vector<8xf32> to vector<8x1xf32>
    %cst_14 = arith.constant 1.600000e+01 : f32
    %34 = vector.broadcast %cst_14 : f32 to vector<8x1xf32>
    %35 = arith.divf %33, %34 : vector<8x1xf32>
    %36 = arith.negf %35 : vector<8x1xf32>
    %37 = math.exp %36 : vector<8x1xf32>
    %cst_15 = arith.constant 1.000000e+00 : f32
    %38 = vector.broadcast %cst_15 : f32 to vector<8x1xf32>
    %39 = arith.addf %38, %37 : vector<8x1xf32>
    %40 = arith.divf %38, %39 : vector<8x1xf32>
    %cst_16 = arith.constant dense<0.000000e+00> : vector<8xf32>
    %41 = vector.multi_reduction <add>, %23, %cst_16 [1] : vector<8x16xf32> to vector<8xf32>
    %42 = vector.shape_cast %41 : vector<8xf32> to vector<8x1xf32>
    %cst_17 = arith.constant 1.600000e+01 : f32
    %43 = vector.broadcast %cst_17 : f32 to vector<8x1xf32>
    %44 = arith.divf %42, %43 : vector<8x1xf32>
    %45 = arith.negf %44 : vector<8x1xf32>
    %46 = math.exp %45 : vector<8x1xf32>
    %cst_18 = arith.constant 1.000000e+00 : f32
    %47 = vector.broadcast %cst_18 : f32 to vector<8x1xf32>
    %48 = arith.addf %47, %46 : vector<8x1xf32>
    %49 = arith.divf %47, %48 : vector<8x1xf32>
    %50 = vector.broadcast %40 : vector<8x1xf32> to vector<8x32xf32>
    %51 = arith.mulf %50, %27 : vector<8x32xf32>
    %cst_19 = arith.constant 1.000000e+00 : f32
    %52 = vector.broadcast %cst_19 : f32 to vector<8x1xf32>
    %53 = arith.subf %52, %40 : vector<8x1xf32>
    %54 = vector.broadcast %53 : vector<8x1xf32> to vector<8x32xf32>
    %55 = arith.mulf %54, %11 : vector<8x32xf32>
    %56 = arith.addf %51, %55 : vector<8x32xf32>
    %57 = vector.broadcast %49 : vector<8x1xf32> to vector<8x32xf32>
    %58 = arith.mulf %57, %31 : vector<8x32xf32>
    %cst_20 = arith.constant 1.000000e+00 : f32
    %59 = vector.broadcast %cst_20 : f32 to vector<8x1xf32>
    %60 = arith.subf %59, %49 : vector<8x1xf32>
    %61 = vector.broadcast %60 : vector<8x1xf32> to vector<8x32xf32>
    %62 = arith.mulf %61, %13 : vector<8x32xf32>
    %63 = arith.addf %58, %62 : vector<8x32xf32>
    %cst_21 = arith.constant 0.699999988 : f32
    %64 = vector.broadcast %cst_21 : f32 to vector<8x32xf32>
    %65 = arith.mulf %64, %7 : vector<8x32xf32>
    %cst_22 = arith.constant 3.000000e-01 : f32
    %66 = vector.broadcast %cst_22 : f32 to vector<8x32xf32>
    %67 = arith.mulf %66, %56 : vector<8x32xf32>
    %68 = arith.addf %65, %67 : vector<8x32xf32>
    %cst_23 = arith.constant 0.699999988 : f32
    %69 = vector.broadcast %cst_23 : f32 to vector<8x32xf32>
    %70 = arith.mulf %69, %8 : vector<8x32xf32>
    %cst_24 = arith.constant 3.000000e-01 : f32
    %71 = vector.broadcast %cst_24 : f32 to vector<8x32xf32>
    %72 = arith.mulf %71, %63 : vector<8x32xf32>
    %73 = arith.addf %70, %72 : vector<8x32xf32>
    %cst_25 = arith.constant 0.531829596 : f32
    %74 = vector.broadcast %cst_25 : f32 to vector<8x16xf32>
    %75 = arith.mulf %20, %74 : vector<8x16xf32>
    %76 = arith.truncf %75 : vector<8x16xf32> to vector<8x16xbf16>
    %cst_26 = arith.constant 0.531829596 : f32
    %77 = vector.broadcast %cst_26 : f32 to vector<8x16xf32>
    %78 = arith.mulf %23, %77 : vector<8x16xf32>
    %79 = arith.truncf %78 : vector<8x16xf32> to vector<8x16xbf16>
    %80 = vector.extract_strided_slice %68 {offsets = [0, 0], sizes = [8, 8], strides = [1, 1]} : vector<8x32xf32> to vector<8x8xf32>
    %81 = arith.truncf %80 : vector<8x8xf32> to vector<8x8xbf16>
    %c0_27 = arith.constant 0 : index
    %c0_28 = arith.constant 0 : index
    %c0_29 = arith.constant 0 : index
    %c0_30 = arith.constant 0 : index
    %82 = vector.load %arg6[%c0_27, %c0_28, %c0_29, %c0_30] : memref<1x4x8x24xbf16, #tpu.memory_space<vmem>>, vector<1x1x8x8xbf16>
    %83 = vector.shape_cast %82 : vector<1x1x8x8xbf16> to vector<8x8xbf16>
    %84 = vector.shape_cast %81 : vector<8x8xbf16> to vector<1x1x8x8xbf16>
    tpu.vector_store %arg6[%c0_27, %c0_28, %c0_29, %c0_30], %84 {strides = array<i32>} : memref<1x4x8x24xbf16, #tpu.memory_space<vmem>>, vector<1x1x8x8xbf16>,
    %c0_31 = arith.constant 0 : index
    %c0_32 = arith.constant 0 : index
    %c0_33 = arith.constant 0 : index
    %c8 = arith.constant 8 : index
    %85 = vector.load %arg6[%c0_31, %c0_32, %c0_33, %c8] : memref<1x4x8x24xbf16, #tpu.memory_space<vmem>>, vector<1x1x8x16xbf16>
    %86 = vector.shape_cast %85 : vector<1x1x8x16xbf16> to vector<8x16xbf16>
    %87 = vector.shape_cast %76 : vector<8x16xbf16> to vector<1x1x8x16xbf16>
    tpu.vector_store %arg6[%c0_31, %c0_32, %c0_33, %c8], %87 {strides = array<i32>} : memref<1x4x8x24xbf16, #tpu.memory_space<vmem>>, vector<1x1x8x16xbf16>,
    %88 = vector.extract_strided_slice %73 {offsets = [0, 0], sizes = [8, 8], strides = [1, 1]} : vector<8x32xf32> to vector<8x8xf32>
    %89 = arith.truncf %88 : vector<8x8xf32> to vector<8x8xbf16>
    %c0_34 = arith.constant 0 : index
    %c0_35 = arith.constant 0 : index
    %c0_36 = arith.constant 0 : index
    %c0_37 = arith.constant 0 : index
    %90 = vector.load %arg7[%c0_34, %c0_35, %c0_36, %c0_37] : memref<1x4x8x24xbf16, #tpu.memory_space<vmem>>, vector<1x1x8x8xbf16>
    %91 = vector.shape_cast %90 : vector<1x1x8x8xbf16> to vector<8x8xbf16>
    %92 = vector.shape_cast %89 : vector<8x8xbf16> to vector<1x1x8x8xbf16>
    tpu.vector_store %arg7[%c0_34, %c0_35, %c0_36, %c0_37], %92 {strides = array<i32>} : memref<1x4x8x24xbf16, #tpu.memory_space<vmem>>, vector<1x1x8x8xbf16>,
    %c0_38 = arith.constant 0 : index
    %c0_39 = arith.constant 0 : index
    %c0_40 = arith.constant 0 : index
    %c8_41 = arith.constant 8 : index
    %93 = vector.load %arg7[%c0_38, %c0_39, %c0_40, %c8_41] : memref<1x4x8x24xbf16, #tpu.memory_space<vmem>>, vector<1x1x8x16xbf16>
    %94 = vector.shape_cast %93 : vector<1x1x8x16xbf16> to vector<8x16xbf16>
    %95 = vector.shape_cast %79 : vector<8x16xbf16> to vector<1x1x8x16xbf16>
    tpu.vector_store %arg7[%c0_38, %c0_39, %c0_40, %c8_41], %95 {strides = array<i32>} : memref<1x4x8x24xbf16, #tpu.memory_space<vmem>>, vector<1x1x8x16xbf16>,
    %96 = vector.extract_strided_slice %9 {offsets = [0, 0], sizes = [8, 8], strides = [1, 1]} : vector<8x32xf32> to vector<8x8xf32>
    %97 = arith.truncf %96 : vector<8x8xf32> to vector<8x8xbf16>
    %c0_42 = arith.constant 0 : index
    %c0_43 = arith.constant 0 : index
    %c0_44 = arith.constant 0 : index
    %c0_45 = arith.constant 0 : index
    %98 = vector.load %arg8[%c0_42, %c0_43, %c0_44, %c0_45] : memref<1x4x8x8xbf16, #tpu.memory_space<vmem>>, vector<1x1x8x8xbf16>
    %99 = vector.shape_cast %98 : vector<1x1x8x8xbf16> to vector<8x8xbf16>
    %100 = vector.shape_cast %97 : vector<8x8xbf16> to vector<1x1x8x8xbf16>
    tpu.vector_store %arg8[%c0_42, %c0_43, %c0_44, %c0_45], %100 {strides = array<i32>} : memref<1x4x8x8xbf16, #tpu.memory_space<vmem>>, vector<1x1x8x8xbf16>,
    %101 = vector.extract_strided_slice %68 {offsets = [0, 8], sizes = [8, 8], strides = [1, 1]} : vector<8x32xf32> to vector<8x8xf32>
    %102 = arith.truncf %101 : vector<8x8xf32> to vector<8x8xbf16>
    %c0_46 = arith.constant 0 : index
    %c1_47 = arith.constant 1 : index
    %c0_48 = arith.constant 0 : index
    %c0_49 = arith.constant 0 : index
    %103 = vector.load %arg6[%c0_46, %c1_47, %c0_48, %c0_49] : memref<1x4x8x24xbf16, #tpu.memory_space<vmem>>, vector<1x1x8x8xbf16>
    %104 = vector.shape_cast %103 : vector<1x1x8x8xbf16> to vector<8x8xbf16>
    %105 = vector.shape_cast %102 : vector<8x8xbf16> to vector<1x1x8x8xbf16>
    tpu.vector_store %arg6[%c0_46, %c1_47, %c0_48, %c0_49], %105 {strides = array<i32>} : memref<1x4x8x24xbf16, #tpu.memory_space<vmem>>, vector<1x1x8x8xbf16>,
    %c0_50 = arith.constant 0 : index
    %c1_51 = arith.constant 1 : index
    %c0_52 = arith.constant 0 : index
    %c8_53 = arith.constant 8 : index
    %106 = vector.load %arg6[%c0_50, %c1_51, %c0_52, %c8_53] : memref<1x4x8x24xbf16, #tpu.memory_space<vmem>>, vector<1x1x8x16xbf16>
    %107 = vector.shape_cast %106 : vector<1x1x8x16xbf16> to vector<8x16xbf16>
    %108 = vector.shape_cast %76 : vector<8x16xbf16> to vector<1x1x8x16xbf16>
    tpu.vector_store %arg6[%c0_50, %c1_51, %c0_52, %c8_53], %108 {strides = array<i32>} : memref<1x4x8x24xbf16, #tpu.memory_space<vmem>>, vector<1x1x8x16xbf16>,
    %109 = vector.extract_strided_slice %73 {offsets = [0, 8], sizes = [8, 8], strides = [1, 1]} : vector<8x32xf32> to vector<8x8xf32>
    %110 = arith.truncf %109 : vector<8x8xf32> to vector<8x8xbf16>
    %c0_54 = arith.constant 0 : index
    %c1_55 = arith.constant 1 : index
    %c0_56 = arith.constant 0 : index
    %c0_57 = arith.constant 0 : index
    %111 = vector.load %arg7[%c0_54, %c1_55, %c0_56, %c0_57] : memref<1x4x8x24xbf16, #tpu.memory_space<vmem>>, vector<1x1x8x8xbf16>
    %112 = vector.shape_cast %111 : vector<1x1x8x8xbf16> to vector<8x8xbf16>
    %113 = vector.shape_cast %110 : vector<8x8xbf16> to vector<1x1x8x8xbf16>
    tpu.vector_store %arg7[%c0_54, %c1_55, %c0_56, %c0_57], %113 {strides = array<i32>} : memref<1x4x8x24xbf16, #tpu.memory_space<vmem>>, vector<1x1x8x8xbf16>,
    %c0_58 = arith.constant 0 : index
    %c1_59 = arith.constant 1 : index
    %c0_60 = arith.constant 0 : index
    %c8_61 = arith.constant 8 : index
    %114 = vector.load %arg7[%c0_58, %c1_59, %c0_60, %c8_61] : memref<1x4x8x24xbf16, #tpu.memory_space<vmem>>, vector<1x1x8x16xbf16>
    %115 = vector.shape_cast %114 : vector<1x1x8x16xbf16> to vector<8x16xbf16>
    %116 = vector.shape_cast %79 : vector<8x16xbf16> to vector<1x1x8x16xbf16>
    tpu.vector_store %arg7[%c0_58, %c1_59, %c0_60, %c8_61], %116 {strides = array<i32>} : memref<1x4x8x24xbf16, #tpu.memory_space<vmem>>, vector<1x1x8x16xbf16>,
    %117 = vector.extract_strided_slice %9 {offsets = [0, 8], sizes = [8, 8], strides = [1, 1]} : vector<8x32xf32> to vector<8x8xf32>
    %118 = arith.truncf %117 : vector<8x8xf32> to vector<8x8xbf16>
    %c0_62 = arith.constant 0 : index
    %c1_63 = arith.constant 1 : index
    %c0_64 = arith.constant 0 : index
    %c0_65 = arith.constant 0 : index
    %119 = vector.load %arg8[%c0_62, %c1_63, %c0_64, %c0_65] : memref<1x4x8x8xbf16, #tpu.memory_space<vmem>>, vector<1x1x8x8xbf16>
    %120 = vector.shape_cast %119 : vector<1x1x8x8xbf16> to vector<8x8xbf16>
    %121 = vector.shape_cast %118 : vector<8x8xbf16> to vector<1x1x8x8xbf16>
    tpu.vector_store %arg8[%c0_62, %c1_63, %c0_64, %c0_65], %121 {strides = array<i32>} : memref<1x4x8x8xbf16, #tpu.memory_space<vmem>>, vector<1x1x8x8xbf16>,
    %122 = vector.extract_strided_slice %68 {offsets = [0, 16], sizes = [8, 8], strides = [1, 1]} : vector<8x32xf32> to vector<8x8xf32>
    %123 = arith.truncf %122 : vector<8x8xf32> to vector<8x8xbf16>
    %c0_66 = arith.constant 0 : index
    %c2 = arith.constant 2 : index
    %c0_67 = arith.constant 0 : index
    %c0_68 = arith.constant 0 : index
    %124 = vector.load %arg6[%c0_66, %c2, %c0_67, %c0_68] : memref<1x4x8x24xbf16, #tpu.memory_space<vmem>>, vector<1x1x8x8xbf16>
    %125 = vector.shape_cast %124 : vector<1x1x8x8xbf16> to vector<8x8xbf16>
    %126 = vector.shape_cast %123 : vector<8x8xbf16> to vector<1x1x8x8xbf16>
    tpu.vector_store %arg6[%c0_66, %c2, %c0_67, %c0_68], %126 {strides = array<i32>} : memref<1x4x8x24xbf16, #tpu.memory_space<vmem>>, vector<1x1x8x8xbf16>,
    %c0_69 = arith.constant 0 : index
    %c2_70 = arith.constant 2 : index
    %c0_71 = arith.constant 0 : index
    %c8_72 = arith.constant 8 : index
    %127 = vector.load %arg6[%c0_69, %c2_70, %c0_71, %c8_72] : memref<1x4x8x24xbf16, #tpu.memory_space<vmem>>, vector<1x1x8x16xbf16>
    %128 = vector.shape_cast %127 : vector<1x1x8x16xbf16> to vector<8x16xbf16>
    %129 = vector.shape_cast %76 : vector<8x16xbf16> to vector<1x1x8x16xbf16>
    tpu.vector_store %arg6[%c0_69, %c2_70, %c0_71, %c8_72], %129 {strides = array<i32>} : memref<1x4x8x24xbf16, #tpu.memory_space<vmem>>, vector<1x1x8x16xbf16>,
    %130 = vector.extract_strided_slice %73 {offsets = [0, 16], sizes = [8, 8], strides = [1, 1]} : vector<8x32xf32> to vector<8x8xf32>
    %131 = arith.truncf %130 : vector<8x8xf32> to vector<8x8xbf16>
    %c0_73 = arith.constant 0 : index
    %c2_74 = arith.constant 2 : index
    %c0_75 = arith.constant 0 : index
    %c0_76 = arith.constant 0 : index
    %132 = vector.load %arg7[%c0_73, %c2_74, %c0_75, %c0_76] : memref<1x4x8x24xbf16, #tpu.memory_space<vmem>>, vector<1x1x8x8xbf16>
    %133 = vector.shape_cast %132 : vector<1x1x8x8xbf16> to vector<8x8xbf16>
    %134 = vector.shape_cast %131 : vector<8x8xbf16> to vector<1x1x8x8xbf16>
    tpu.vector_store %arg7[%c0_73, %c2_74, %c0_75, %c0_76], %134 {strides = array<i32>} : memref<1x4x8x24xbf16, #tpu.memory_space<vmem>>, vector<1x1x8x8xbf16>,
    %c0_77 = arith.constant 0 : index
    %c2_78 = arith.constant 2 : index
    %c0_79 = arith.constant 0 : index
    %c8_80 = arith.constant 8 : index
    %135 = vector.load %arg7[%c0_77, %c2_78, %c0_79, %c8_80] : memref<1x4x8x24xbf16, #tpu.memory_space<vmem>>, vector<1x1x8x16xbf16>
    %136 = vector.shape_cast %135 : vector<1x1x8x16xbf16> to vector<8x16xbf16>
    %137 = vector.shape_cast %79 : vector<8x16xbf16> to vector<1x1x8x16xbf16>
    tpu.vector_store %arg7[%c0_77, %c2_78, %c0_79, %c8_80], %137 {strides = array<i32>} : memref<1x4x8x24xbf16, #tpu.memory_space<vmem>>, vector<1x1x8x16xbf16>,
    %138 = vector.extract_strided_slice %9 {offsets = [0, 16], sizes = [8, 8], strides = [1, 1]} : vector<8x32xf32> to vector<8x8xf32>
    %139 = arith.truncf %138 : vector<8x8xf32> to vector<8x8xbf16>
    %c0_81 = arith.constant 0 : index
    %c2_82 = arith.constant 2 : index
    %c0_83 = arith.constant 0 : index
    %c0_84 = arith.constant 0 : index
    %140 = vector.load %arg8[%c0_81, %c2_82, %c0_83, %c0_84] : memref<1x4x8x8xbf16, #tpu.memory_space<vmem>>, vector<1x1x8x8xbf16>
    %141 = vector.shape_cast %140 : vector<1x1x8x8xbf16> to vector<8x8xbf16>
    %142 = vector.shape_cast %139 : vector<8x8xbf16> to vector<1x1x8x8xbf16>
    tpu.vector_store %arg8[%c0_81, %c2_82, %c0_83, %c0_84], %142 {strides = array<i32>} : memref<1x4x8x8xbf16, #tpu.memory_space<vmem>>, vector<1x1x8x8xbf16>,
    %143 = vector.extract_strided_slice %68 {offsets = [0, 24], sizes = [8, 8], strides = [1, 1]} : vector<8x32xf32> to vector<8x8xf32>
    %144 = arith.truncf %143 : vector<8x8xf32> to vector<8x8xbf16>
    %c0_85 = arith.constant 0 : index
    %c3 = arith.constant 3 : index
    %c0_86 = arith.constant 0 : index
    %c0_87 = arith.constant 0 : index
    %145 = vector.load %arg6[%c0_85, %c3, %c0_86, %c0_87] : memref<1x4x8x24xbf16, #tpu.memory_space<vmem>>, vector<1x1x8x8xbf16>
    %146 = vector.shape_cast %145 : vector<1x1x8x8xbf16> to vector<8x8xbf16>
    %147 = vector.shape_cast %144 : vector<8x8xbf16> to vector<1x1x8x8xbf16>
    tpu.vector_store %arg6[%c0_85, %c3, %c0_86, %c0_87], %147 {strides = array<i32>} : memref<1x4x8x24xbf16, #tpu.memory_space<vmem>>, vector<1x1x8x8xbf16>,
    %c0_88 = arith.constant 0 : index
    %c3_89 = arith.constant 3 : index
    %c0_90 = arith.constant 0 : index
    %c8_91 = arith.constant 8 : index
    %148 = vector.load %arg6[%c0_88, %c3_89, %c0_90, %c8_91] : memref<1x4x8x24xbf16, #tpu.memory_space<vmem>>, vector<1x1x8x16xbf16>
    %149 = vector.shape_cast %148 : vector<1x1x8x16xbf16> to vector<8x16xbf16>
    %150 = vector.shape_cast %76 : vector<8x16xbf16> to vector<1x1x8x16xbf16>
    tpu.vector_store %arg6[%c0_88, %c3_89, %c0_90, %c8_91], %150 {strides = array<i32>} : memref<1x4x8x24xbf16, #tpu.memory_space<vmem>>, vector<1x1x8x16xbf16>,
    %151 = vector.extract_strided_slice %73 {offsets = [0, 24], sizes = [8, 8], strides = [1, 1]} : vector<8x32xf32> to vector<8x8xf32>
    %152 = arith.truncf %151 : vector<8x8xf32> to vector<8x8xbf16>
    %c0_92 = arith.constant 0 : index
    %c3_93 = arith.constant 3 : index
    %c0_94 = arith.constant 0 : index
    %c0_95 = arith.constant 0 : index
    %153 = vector.load %arg7[%c0_92, %c3_93, %c0_94, %c0_95] : memref<1x4x8x24xbf16, #tpu.memory_space<vmem>>, vector<1x1x8x8xbf16>
    %154 = vector.shape_cast %153 : vector<1x1x8x8xbf16> to vector<8x8xbf16>
    %155 = vector.shape_cast %152 : vector<8x8xbf16> to vector<1x1x8x8xbf16>
    tpu.vector_store %arg7[%c0_92, %c3_93, %c0_94, %c0_95], %155 {strides = array<i32>} : memref<1x4x8x24xbf16, #tpu.memory_space<vmem>>, vector<1x1x8x8xbf16>,
    %c0_96 = arith.constant 0 : index
    %c3_97 = arith.constant 3 : index
    %c0_98 = arith.constant 0 : index
    %c8_99 = arith.constant 8 : index
    %156 = vector.load %arg7[%c0_96, %c3_97, %c0_98, %c8_99] : memref<1x4x8x24xbf16, #tpu.memory_space<vmem>>, vector<1x1x8x16xbf16>
    %157 = vector.shape_cast %156 : vector<1x1x8x16xbf16> to vector<8x16xbf16>
    %158 = vector.shape_cast %79 : vector<8x16xbf16> to vector<1x1x8x16xbf16>
    tpu.vector_store %arg7[%c0_96, %c3_97, %c0_98, %c8_99], %158 {strides = array<i32>} : memref<1x4x8x24xbf16, #tpu.memory_space<vmem>>, vector<1x1x8x16xbf16>,
    %159 = vector.extract_strided_slice %9 {offsets = [0, 24], sizes = [8, 8], strides = [1, 1]} : vector<8x32xf32> to vector<8x8xf32>
    %160 = arith.truncf %159 : vector<8x8xf32> to vector<8x8xbf16>
    %c0_100 = arith.constant 0 : index
    %c3_101 = arith.constant 3 : index
    %c0_102 = arith.constant 0 : index
    %c0_103 = arith.constant 0 : index
    %161 = vector.load %arg8[%c0_100, %c3_101, %c0_102, %c0_103] : memref<1x4x8x8xbf16, #tpu.memory_space<vmem>>, vector<1x1x8x8xbf16>
    %162 = vector.shape_cast %161 : vector<1x1x8x8xbf16> to vector<8x8xbf16>
    %163 = vector.shape_cast %160 : vector<8x8xbf16> to vector<1x1x8x8xbf16>
    tpu.vector_store %arg8[%c0_100, %c3_101, %c0_102, %c0_103], %163 {strides = array<i32>} : memref<1x4x8x8xbf16, #tpu.memory_space<vmem>>, vector<1x1x8x8xbf16>,
    return
  }
  func.func @transform_0(%arg0: i32, %arg1: i32) -> (i32, i32, i32) {
    %c0_i32 = arith.constant 0 : i32
    %c0_i32_0 = arith.constant 0 : i32
    return %arg0, %arg1, %c0_i32 : i32, i32, i32
  }
  func.func @transform_1(%arg0: i32, %arg1: i32) -> (i32, i32) {
    %c0_i32 = arith.constant 0 : i32
    %c0_i32_0 = arith.constant 0 : i32
    %c0_i32_1 = arith.constant 0 : i32
    return %c0_i32, %c0_i32_0 : i32, i32
  }
  func.func @transform_2(%arg0: i32, %arg1: i32) -> (i32, i32) {
    %c0_i32 = arith.constant 0 : i32
    %c0_i32_0 = arith.constant 0 : i32
    %c0_i32_1 = arith.constant 0 : i32
    return %c0_i32, %c0_i32_0 : i32, i32
  }
  func.func @transform_3(%arg0: i32, %arg1: i32) -> (i32, i32, i32) {
    %c0_i32 = arith.constant 0 : i32
    %c0_i32_0 = arith.constant 0 : i32
    %c0_i32_1 = arith.constant 0 : i32
    %c0_i32_2 = arith.constant 0 : i32
    return %c0_i32, %c0_i32_0, %c0_i32_1 : i32, i32, i32
  }
  func.func @transform_4(%arg0: i32, %arg1: i32) -> (i32, i32, i32, i32) {
    %c0_i32 = arith.constant 0 : i32
    %c0_i32_0 = arith.constant 0 : i32
    %c0_i32_1 = arith.constant 0 : i32
    return %arg0, %c0_i32, %arg1, %c0_i32_0 : i32, i32, i32, i32
  }
  func.func @transform_5(%arg0: i32, %arg1: i32) -> (i32, i32, i32, i32) {
    %c0_i32 = arith.constant 0 : i32
    %c0_i32_0 = arith.constant 0 : i32
    %c0_i32_1 = arith.constant 0 : i32
    return %arg0, %c0_i32, %arg1, %c0_i32_0 : i32, i32, i32, i32
  }
  func.func @transform_6(%arg0: i32, %arg1: i32) -> (i32, i32, i32, i32) {
    %c0_i32 = arith.constant 0 : i32
    %c0_i32_0 = arith.constant 0 : i32
    %c0_i32_1 = arith.constant 0 : i32
    return %arg0, %c0_i32, %arg1, %c0_i32_0 : i32, i32, i32, i32
  }
}

</mosaic_0001>

<bundles_post_ra>
// kernel: quantum_attention.3
= control target key start
LH: loop header
LB: loop body
LE: loop exit
PB: predicated region body
PF: predicated region fallthrough
CT: control target
= control target key end

     0   :  { %s1551_s0 = inlined_call_operand.vmem [shape: f32[2,8,32], index: 0, kind: input, shape index: {}]   ;;  %s1552_s1 = inlined_call_operand.vmem [shape: bf16[2,4,8,24], index: 1, kind: input, shape index: {}]   ;;  %s1553_s2 = inlined_call_operand.vmem [shape: bf16[2,4,8,24], index: 2, kind: input, shape index: {}]   ;;  %s1554_s3 = inlined_call_operand.vmem [shape: bf16[2,4,8,8], index: 3, kind: input, shape index: {}]   ;;  %s1555_s4 = inlined_call_operand.vmem [shape: bf16[4,8,32], index: 4, kind: input, shape index: {}]   ;;  %s1556_s5 = inlined_call_operand.vmem [shape: f32[1,32], index: 5, kind: input, shape index: {}]   ;;  %s1557_s6 = inlined_call_operand.vmem [shape: f32[1,32], index: 6, kind: input, shape index: {}]   ;;  %s1558_s7 = inlined_call_operand.vmem [shape: f32[1,32], index: 7, kind: input, shape index: {}]   ;;  %s1559_s8 = inlined_call_operand.hbm [shape: f32[2,8,32], index: 8, kind: output, shape index: {0}]   ;;  %s1560_s9 = inlined_call_operand.hbm [shape: f32[2,4,8,8], index: 9, kind: output, shape index: {1}]  }
   0x1   :  { %1561 = sst [smem:[#allocation8_spill]] %s1551_s0 }
   0x2   :  { %1562 = sst [smem:[#allocation9_spill]] %s1552_s1 }
   0x3   :  { %1563 = sst [smem:[#allocation10_spill]] %s1553_s2 }
   0x4   :  { %1564 = sst [smem:[#allocation11_spill]] %s1554_s3 }
   0x5   :  { %1565 = sst [smem:[#allocation12_spill]] %s1555_s4 }
   0x6   :  { %15 = vsyncpa [#allocation3], 0 }
   0x7   :  { %17 = vsyncpa [#allocation3 + $0x1], 0 }
   0x8   :  { %18 = vsyncpa [#allocation5], 0 }
   0x9   :  { %20 = vsyncpa [#allocation5 + $0x1], 0  ;;  %s1333_s30 = smov 0   ;;  %s1335_s10 = smov 0  }
   0xa   :  { %s1337_s11 = smov 0   ;;  %s1339_s12 = smov 0  }
   0xb   :  { %s1341_s13 = smov 0   ;;  %s1343_s14 = smov 0  }
   0xc LB: > { %s1042_s15 = sadd.s32 4294967295, %s1278_s14   ;;  %s1043_s16 = sadd.s32 4294967294, %s1278_s14   ;;  %s1278_s14 = sphi %s1343_s14, %s26_s14   ;;  %s1274_s13 = sphi %s1341_s13, %s1577_s13   ;;  %s1270_s12 = sphi %s1339_s12, %s1576_s12   ;;  %s1266_s11 = sphi %s1337_s11, %s1575_s11   ;;  %s1262_s10 = sphi %s1335_s10, %s1574_s10   ;;  %s1258_s30 = sphi %s1333_s30, %s1573_s30  }
   0xd   : > { %s38_s17 = sadd.s32 1, %s1274_s13  ;;  %s239_s18 = sadd.s32 1, %s1266_s11 }
   0xe   : > { %p40_p0 = scmp.ge.s32.totalorder %s38_s17, 2  ;;  %p249_p1 = scmp.ne.s32.totalorder %s1266_s11, %s1262_s10 }
   0xf   : > { %p250_p2 = scmp.eq.s32.totalorder %s1042_s15, 1  ;;  %p255_p3 = scmp.ne.s32.totalorder %s1262_s10, %s1258_s30 }
  0x10   : > { %s1579_s17 = smov (%p40_p0, %s38_s17), 0  ;;  %p256_p5 = scmp.eq.s32.totalorder %s1043_s16, 1 }
  0x11   : > { %p1373_p4 = por %p250_p2, %p249_p1  ;;  %s234_s20 = ssub.s32 %s1274_s13, %s1579_s17 }
  0x12   : > { %p1046_p6 = scmp.ge.s32.totalorder %s1278_s14, 1  ;;  %p237_p7 = scmp.eq.s32.totalorder %s234_s20, 0 }
  0x13   : > { %p1380_p8 = por %p256_p5, %p255_p3  ;;  %p351_p9 = scmp.lt.s32.totalorder %s1278_s14, 3 }
  0x14   : > { %s1386_s22 = scalar_select %p237_p7, %s1266_s11, %s239_s18  }
  0x15   : > { %p352_p10 = pnand %p1046_p6, %p351_p9 }
  0x16   : > { %p412_p11 = scmp.lt.s32.totalorder (!%p352_p10), %s1270_s12, 1  ;;  %s1568_s2 = sld [smem:[#allocation10_spill]] (!%p352_p10) }
  0x17   : > { %355 = sbr.rel (%p352_p10) target bundleno = 992 (0x3e0), region = 52  ;;  %s1569_s1 = sld [smem:[#allocation9_spill]] (!%p352_p10) }
  0x18   : > { %s1570_s3 = sld [smem:[#allocation11_spill]] (!%p352_p10) }
  0x19   : > { %s1571_s4 = sld [smem:[#allocation12_spill]] (!%p352_p10) }
  0x1a   : > { %s1572_s0 = sld [smem:[#allocation8_spill]] (!%p352_p10) }
  0x1c   : > { %s1390_s23 = scalar_select %p412_p11, %s1270_s12, 1  ;;  %vm450_vm0 = vcmask 195584   ;;  %vm531_vm1 = vcmask 64512   ;;  %vm643_vm2 = vcmask 1043456  }
  0x1e   : > { %s1393_s24 = sshll.u32 %s1390_s23, 4 }
  0x1f   : > { %s431_s27 = scalar_lea.vmem %s1568_s2, %s1393_s24  ;;  %s426_s15 = scalar_lea.vmem %s1569_s1, %s1393_s24 }
  0x20   : > { %v442_v0 = vld [vmem:[%s431_s27] sm:$0xf]  ;;  %v444_v1 = vld [vmem:[%s431_s27 + $0x8] sm:$0xf]  ;;  %v445_v2 = vld [vmem:[%s431_s27 + $0xc] sm:$0xf]  ;;  %s436_s20 = scalar_lea.vmem %s1570_s3, %s1393_s24 }
  0x21   : > { %v455_v3 = vsel %vm450_vm0, %v442_v0, 0  ;;  %v493_v4 = vsel %vm450_vm0, %v444_v1, 0  ;;  %v512_v5 = vsel %vm450_vm0, %v445_v2, 0  ;;  %v443_v6 = vld [vmem:[%s431_s27 + $0x4] sm:$0xf]  ;;  %s1440_s24 = sand.u32 1, %s1262_s10  }
  0x22   : > { %464 = vmatpush.bf16.xpose.msra.mxu0 %v455_v3  ;;  %502 = vmatpush.bf16.xpose.msra.mxu2 %v493_v4  ;;  %v474_v7 = vsel %vm450_vm0, %v443_v6, 0  ;;  %v438_v8 = vld [vmem:[%s426_s15] sm:$0xf]  ;;  %v440_v9 = vld [vmem:[%s426_s15 + $0x8] sm:$0xf]  ;;  %s1048_s25 = sshll.u32 %s1440_s24, 5 }
  0x23   : > { %521 = vmatpush.bf16.xpose.msra.mxu3 %v512_v5  ;;  %483 = vmatpush.bf16.xpose.msra.mxu1 %v474_v7  ;;  %v441_v10 = vld [vmem:[%s426_s15 + $0xc] sm:$0xf]  ;;  %v439_v11 = vld [vmem:[%s426_s15 + $0x4] sm:$0xf]  ;;  %v446_v48 = vld [vmem:[%s436_s20] sm:$0xf] }
  0x24   : > { %v645_v49 = vsel %vm643_vm2, %v446_v48, 0  ;;  %v448_v50 = vld [vmem:[%s436_s20 + $0x8] sm:$0xf]  ;;  %v447_v52 = vld [vmem:[%s436_s20 + $0x4] sm:$0xf]  ;;  %s1444_s26 = scalar_lea.vmem [#allocation4], %s1048_s25 }
  0x25   : > { %v683_v51 = vsel %vm643_vm2, %v448_v50, 0  ;;  %v664_v53 = vsel %vm643_vm2, %v447_v52, 0  ;;  %v449_v54 = vld [vmem:[%s436_s20 + $0xc] sm:$0xf]  ;;  %v1064_v50 = vld [vmem:[%s1571_s4 + $0x4] sm:$0xf] }
  0x26   : > { %v702_v55 = vsel %vm643_vm2, %v449_v54, 0  ;;  %s1049_s27 = sshll.u32 %s1390_s23, 3  ;;  %s1081_s23 = sshll.u32 %s1270_s12, 5 }
  0x27   : > { %s418_s18 = scalar_lea.vmem %s1572_s0, %s1049_s27  ;;  %s887_s27 = scalar_lea.hbm %s1560_s9, %s1081_s23 }
  0x28   : > { %s888_s28 = sshll.u32 %s1444_s26, 4  ;;  %s890_s29 = sshll.u32 %s887_s27, 4  ;;  %s889_s28 = int_to_ptr.vmem [resolvable:$true] %s888_s28  ;;  %s891_s29 = int_to_ptr.hbm [resolvable:$true] %s890_s29 }
  0x29   : > { %1056 = vmatmul.msk.bf16.vlgmr.msra.gmra.mxu0 %vm450_vm0, %v438_v8  ;;  %1058 = vmatmul.msk.bf16.vlgmr.msra.gmra.mxu2 %vm450_vm0, %v440_v9  ;;  %s860_s15 = scalar_lea.sflag [#allocation5], %s1440_s24  ;;  %s1182_s16 = sshra.s32 %s891_s29, 4  ;;  %s1183_s16 = int_to_ptr.hbm [resolvable:$true] %s1182_s16 }
  0x2a   : > { %1059 = vmatmul.msk.bf16.vlgmr.msra.gmra.mxu3 %vm450_vm0, %v441_v10  ;;  %1057 = vmatmul.msk.bf16.vlgmr.msra.gmra.mxu1 %vm450_vm0, %v439_v11  ;;  %s1188_s2 = scalar_lea.hbm %s1560_s9, 64  ;;  %p1189_p1 = scmp.lt.s32.totalorder %s1183_s16, %s1560_s9 }
  0x2b   : > { %654 = vmatpush.bf16.msrb.mxu0 %v645_v49  ;;  %692 = vmatpush.bf16.msrb.mxu2 %v683_v51  ;;  %v728_v51 = vsel %vm643_vm2, %v1064_v50, 0 }
  0x2c   : > { %673 = vmatpush.bf16.msrb.mxu1 %v664_v53  ;;  %711 = vmatpush.bf16.msrb.mxu3 %v702_v55 }
  0x2f   : > { %737 = vmatpush.bf16.msra.mxu0 %v728_v51 }
  0xa6   : > { %v466_v12 = vpop.f32.mrf.mxu0 }
  0xa7   : > { %v527_v13 = vmul.f32 0.35355338, %v466_v12  ;;  %v485_v14 = vpop.f32.mrf.mxu1 }
  0xa8   : > { %v528_v16 = vmul.f32 0.35355338, %v485_v14 }
  0xa9   : > { %v532_v15 = vsel %vm531_vm1, %v527_v13, -inf }
  0xaa   : > { %533 = vmax.xlane.f32.xlu1 %v532_v15  ;;  %v535_v22 = vsel %vm531_vm1, %v528_v16, -inf }
  0xac   : > { %v504_v17 = vpop.f32.mrf.mxu2 }
  0xad   : > { %v529_v18 = vmul.f32 0.35355338, %v504_v17  ;;  %v523_v19 = vpop.f32.mrf.mxu3 }
  0xae   : > { %v468_v20 = vpop.f32.mrf.mxu0  ;;  %v530_v24 = vmul.f32 0.35355338, %v523_v19 }
  0xaf   : > { %v538_v21 = vsel %vm531_vm1, %v529_v18, -inf  ;;  %v487_v23 = vpop.f32.mrf.mxu1 }
  0xb0   : > { %539 = vmax.xlane.f32.xlu0 %v538_v21  ;;  %v541_v27 = vsel %vm531_vm1, %v530_v24, -inf }
  0xb2   : > { %536 = vmax.xlane.f32.xlu1 %v535_v22 }
  0xb4   : > { %v506_v25 = vpop.f32.mrf.mxu2 }
  0xb5   : > { %v525_v26 = vpop.f32.mrf.mxu3 }
  0xb8   : > { %542 = vmax.xlane.f32.xlu0 %v541_v27 }
 0x11d   : > { %v534_v28 = vpop.xlane.xlu1 %533 }
 0x11e   : > { %v544_v29 = vsub.f32 %v527_v13, %v534_v28 }
 0x120   : > { %v548_v30 = vmul.f32 1.442695, %v544_v29 }
 0x122   : > { %1148 = vpow2.f32 %v548_v30 }
 0x123   : > { %v540_v31 = vpop.xlane.xlu0 %539 }
 0x124   : > { %v546_v32 = vsub.f32 %v529_v18, %v540_v31 }
 0x125   : > { %v537_v33 = vpop.xlane.xlu1 %536 }
 0x126   : > { %v552_v34 = vmul.f32 1.442695, %v546_v32  ;;  %v545_v35 = vsub.f32 %v528_v16, %v537_v33 }
 0x128   : > { %v1415_v36 = vpop.eup %1148  ;;  %1150 = vpow2.f32 %v552_v34  ;;  %v550_v37 = vmul.f32 1.442695, %v545_v35 }
 0x129   : > { %v556_v38 = vsel %vm531_vm1, %v1415_v36, 0.0 }
 0x12a   : > { %1152 = vpow2.f32 %v550_v37  ;;  %557 = vadd.xlane.f32.xlu0 %v556_v38 }
 0x12b   : > { %v543_v39 = vpop.xlane.xlu0 %542 }
 0x12c   : > { %v547_v40 = vsub.f32 %v530_v24, %v543_v39 }
 0x12e   : > { %v1419_v41 = vpop.eup %1150  ;;  %v554_v42 = vmul.f32 1.442695, %v547_v40 }
 0x12f   : > { %v562_v43 = vsel %vm531_vm1, %v1419_v41, 0.0 }
 0x130   : > { %v1423_v44 = vpop.eup %1152  ;;  %1154 = vpow2.f32 %v554_v42  ;;  %563 = vadd.xlane.f32.xlu2 %v562_v43 }
 0x131   : > { %v559_v45 = vsel %vm531_vm1, %v1423_v44, 0.0 }
 0x132   : > { %560 = vadd.xlane.f32.xlu1 %v559_v45 }
 0x136   : > { %v1427_v46 = vpop.eup %1154 }
 0x137   : > { %v565_v47 = vsel %vm531_vm1, %v1427_v46, 0.0 }
 0x138   : > { %566 = vadd.xlane.f32.xlu2 %v565_v47  ;;  %v1067_v47 = vld [vmem:[%s1571_s4 + $0x8] sm:$0xf] }
 0x139   : > { %v768_v48 = vsel %vm643_vm2, %v1067_v47, 0 }
 0x13a   : > { %777 = vmatpush.bf16.msra.mxu2 %v768_v48 }
 0x19d   : > { %v558_v56 = vpop.xlane.xlu0 %557 }
 0x19e   : > { %1156 = vrcp.f32 %v558_v56  ;;  %v579_v62 = vand.u32 2147483648, %v558_v56  ;;  %v577_v0 = vand.u32 2147483647, %v558_v56  ;;  %vm573_vm4 = vweird.f32 %v558_v56 }
 0x1a0   : > { %v580_v6 = vor.u32 1.1754944e-38, %v579_v62  ;;  %vm578_vm6 = vcmp.eq.f32.partialorder %v577_v0, 8.507059e+37 }
 0x1a3   : > { %v564_v57 = vpop.xlane.xlu2 %563 }
 0x1a4   : > { %v1157_v58 = vpop.eup %1156  ;;  %1158 = vrcp.f32 %v564_v57  ;;  %v607_v10 = vand.u32 2147483647, %v564_v57  ;;  %v609_v11 = vand.u32 2147483648, %v564_v57  ;;  %vm603_vm8 = vweird.f32 %v564_v57 }
 0x1a5   : > { %v569_v59 = vmul.f32 %v1157_v58, %v558_v56  ;;  %v561_v60 = vpop.xlane.xlu1 %560  ;;  %vm574_vm3 = vweird.f32 %v1157_v58 }
 0x1a6   : > { %1160 = vrcp.f32 %v561_v60  ;;  %vm575_vm5 = vmor %vm573_vm4, %vm574_vm3  ;;  %v592_v16 = vand.u32 2147483647, %v561_v60  ;;  %v594_v17 = vand.u32 2147483648, %v561_v60  ;;  %vm608_vm11 = vcmp.eq.f32.partialorder %v607_v10, 8.507059e+37 }
 0x1a7   : > { %v570_v61 = vsub.f32 1.0, %v569_v59  ;;  %v610_v22 = vor.u32 1.1754944e-38, %v609_v11  ;;  %vm588_vm12 = vweird.f32 %v561_v60  ;;  %v811_v11 = vld [vmem:[%s418_s18] sm:$0xff]  ;;  %s1184_s18 = scalar_lea.hbm %s1183_s16, 32 }
 0x1a8   : > { %v595_v26 = vor.u32 1.1754944e-38, %v594_v17  ;;  %vm593_vm14 = vcmp.eq.f32.partialorder %v592_v16, 8.507059e+37  ;;  %v1280_v16 = vmov 32.0   ;;  %p1185_p12 = scmp.ne.s32.totalorder %s1183_s16, %s1184_s18  ;;  %p1190_p2 = scmp.lt.s32.totalorder %s1188_s2, %s1184_s18 }
 0x1a9   : > { %v571_v63 = vmul.f32 %v1157_v58, %v570_v61 }
 0x1aa   : > { %v1159_v1 = vpop.eup %1158  ;;  %p1186_p13 = pnand %p1185_p12, %p1373_p4  ;;  %p1191_p3 = por %p1190_p2, %p1189_p1 }
 0x1ab   : > { %v572_v2 = vadd.f32 %v1157_v58, %v571_v63  ;;  %v599_v3 = vmul.f32 %v1159_v1, %v564_v57  ;;  %v567_v4 = vpop.xlane.xlu2 %566  ;;  %vm604_vm7 = vweird.f32 %v1159_v1 }
 0x1ac   : > { %v1161_v5 = vpop.eup %1160  ;;  %1162 = vrcp.f32 %v567_v4  ;;  %vm605_vm10 = vmor %vm603_vm8, %vm604_vm7  ;;  %v622_v32 = vand.u32 2147483647, %v567_v4  ;;  %v624_v33 = vand.u32 2147483648, %v567_v4  ;;  %vm618_vm0 = vweird.f32 %v567_v4  ;;  %p1187_p0 = pneg %p1186_p13 }
 0x1ad   : > { %v576_v7 = vsel %vm575_vm5, %v1157_v58, %v572_v2  ;;  %v600_v8 = vsub.f32 1.0, %v599_v3  ;;  %v584_v9 = vmul.f32 %v1161_v5, %v561_v60  ;;  %vm589_vm9 = vweird.f32 %v1161_v5 }
 0x1ae   : > { %v581_v12 = vsel %vm578_vm6, %v580_v6, %v576_v7  ;;  %vm590_vm13 = vmor %vm588_vm12, %vm589_vm9  ;;  %v625_v39 = vor.u32 1.1754944e-38, %v624_v33  ;;  %vm623_vm4 = vcmp.eq.f32.partialorder %v622_v32, 8.507059e+37  ;;  %v1145_v7 = vld [vmem:[%s1556_s5] ss:$0 sm:$0xff]  ;;  %1164 = vrcp.f32 %v1280_v16  ;;  %p1192_p5 = pnand %p1191_p3, %p1187_p0 }
 0x1af   : > { %v601_v13 = vmul.f32 %v1159_v1, %v600_v8  ;;  %v585_v14 = vsub.f32 1.0, %v584_v9  ;;  %v628_v15 = vmul.f32 %v1415_v36, %v581_v12 }
 0x1b1   : > { %v602_v18 = vadd.f32 %v1159_v1, %v601_v13  ;;  %v586_v19 = vmul.f32 %v1161_v5, %v585_v14  ;;  %v636_v20 = vpack.c.bf16 %v628_v15, %v628_v15  ;;  %632 = vst.msk [vmem:[%s1444_s26] sm:$0xff] %vm531_vm1, %v628_v15 }
 0x1b2   : > { %v1163_v21 = vpop.eup %1162 }
 0x1b3   : > { %v606_v23 = vsel %vm605_vm10, %v1159_v1, %v602_v18  ;;  %v587_v24 = vadd.f32 %v1161_v5, %v586_v19  ;;  %v614_v25 = vmul.f32 %v1163_v21, %v567_v4  ;;  %1060 = vmatmul.msk.bf16.vlgmr.msrb.gmra.mxu0 %vm531_vm1, %v636_v20  ;;  %vm619_vm15 = vweird.f32 %v1163_v21 }
 0x1b4   : > { %v611_v27 = vsel %vm608_vm11, %v610_v22, %v606_v23  ;;  %vm620_vm3 = vmor %vm618_vm0, %vm619_vm15  ;;  %v1165_v17 = vpop.eup %1164 }
 0x1b5   : > { %v591_v28 = vsel %vm590_vm13, %v1161_v5, %v587_v24  ;;  %v615_v29 = vsub.f32 1.0, %v614_v25  ;;  %v630_v30 = vmul.f32 %v1419_v41, %v611_v27  ;;  %v818_v18 = vmul.f32 32.0, %v1165_v17 }
 0x1b6   : > { %v596_v31 = vsel %vm593_vm14, %v595_v26, %v591_v28 }
 0x1b7   : > { %v616_v34 = vmul.f32 %v1163_v21, %v615_v29  ;;  %v638_v35 = vpack.c.bf16 %v630_v30, %v630_v30  ;;  %v629_v36 = vmul.f32 %v1423_v44, %v596_v31  ;;  %634 = vst.msk [vmem:[%s1444_s26 + $0x10] sm:$0xff] %vm531_vm1, %v630_v30  ;;  %v721_v44 = vld [vmem:[%s1571_s4] sm:$0xf]  ;;  %v819_v19 = vsub.f32 1.0, %v818_v18 }
 0x1b8   : > { %v747_v45 = vsel %vm643_vm2, %v721_v44, 0 }
 0x1b9   : > { %v617_v37 = vadd.f32 %v1163_v21, %v616_v34  ;;  %1062 = vmatmul.msk.bf16.vlgmr.msrb.gmra.mxu2 %vm531_vm1, %v638_v35  ;;  %v637_v38 = vpack.c.bf16 %v629_v36, %v629_v36  ;;  %633 = vst.msk [vmem:[%s1444_s26 + $0x8] sm:$0xff] %vm531_vm1, %v629_v36  ;;  %756 = vmatpush.bf16.msra.mxu1 %v747_v45 }
 0x1ba   : > { %v820_v20 = vmul.f32 %v1165_v17, %v819_v19 }
 0x1bb   : > { %v621_v40 = vsel %vm620_vm3, %v1163_v21, %v617_v37  ;;  %1061 = vmatmul.msk.bf16.vlgmr.msrb.gmra.mxu1 %vm531_vm1, %v637_v38 }
 0x1bc   : > { %v626_v41 = vsel %vm623_vm4, %v625_v39, %v621_v40  ;;  %v821_v21 = vadd.f32 %v1165_v17, %v820_v20 }
 0x1bd   : > { %v631_v42 = vmul.f32 %v1427_v46, %v626_v41  ;;  %v1069_v46 = vld [vmem:[%s1571_s4 + $0xc] sm:$0xf] }
 0x1be   : > { %v790_v49 = vsel %vm643_vm2, %v1069_v46, 0  ;;  %vm822_vm2 = vweird.f32 %v1165_v17 }
 0x1bf   : > { %v639_v43 = vpack.c.bf16 %v631_v42, %v631_v42  ;;  %635 = vst.msk [vmem:[%s1444_s26 + $0x18] sm:$0xff] %vm531_vm1, %v631_v42  ;;  %799 = vmatpush.bf16.msra.mxu3 %v790_v49  ;;  %v823_v22 = vsel %vm822_vm2, %v1165_v17, %v821_v21 }
 0x1c1   : > { %1063 = vmatmul.msk.bf16.vlgmr.msrb.gmra.mxu3 %vm531_vm1, %v639_v43 }
 0x230   : > { %v656_v52 = vpop.f32.mrf.mxu0 }
 0x231   : > { %v717_v53 = vpack.c.bf16 %v656_v52, %v656_v52 }
 0x233   : > { %1066 = vmatmul.msk.bf16.vlgmr.msra.gmra.mxu1 %vm531_vm1, %v717_v53 }
 0x238   : > { %v658_v54 = vpop.f32.mrf.mxu0  ;;  %v675_v55 = vpop.f32.mrf.mxu1 }
 0x239   : > { %v718_v56 = vpack.c.bf16 %v675_v55, %v675_v55 }
 0x23b   : > { %1065 = vmatmul.msk.bf16.vlgmr.msra.gmra.mxu0 %vm531_vm1, %v718_v56 }
 0x23c   : > { %v694_v57 = vpop.f32.mrf.mxu2 }
 0x23d   : > { %v719_v58 = vpack.c.bf16 %v694_v57, %v694_v57 }
 0x23f   : > { %1068 = vmatmul.msk.bf16.vlgmr.msra.gmra.mxu2 %vm531_vm1, %v719_v58 }
 0x240   : > { %v677_v59 = vpop.f32.mrf.mxu1 }
 0x244   : > { %v696_v60 = vpop.f32.mrf.mxu2  ;;  %v713_v61 = vpop.f32.mrf.mxu3 }
 0x245   : > { %v720_v62 = vpack.c.bf16 %v713_v61, %v713_v61 }
 0x247   : > { %1070 = vmatmul.msk.bf16.vlgmr.msra.gmra.mxu3 %vm531_vm1, %v720_v62  ;;  %vm813_vm1 = vcmask 261120  }
 0x24c   : > { %v715_v63 = vpop.f32.mrf.mxu3 }
 0x2b0   : > { %v758_v0 = vpop.f32.mrf.mxu1 }
 0x2b8   : > { %v739_v1 = vpop.f32.mrf.mxu0  ;;  %v760_v2 = vpop.f32.mrf.mxu1 }
 0x2b9   : > { %v759_v5 = vadd.f32 %v758_v0, %v739_v1 }
 0x2c0   : > { %v741_v3 = vpop.f32.mrf.mxu0 }
 0x2c2   : > { %v779_v4 = vpop.f32.mrf.mxu2 }
 0x2c3   : > { %v783_v6 = vadd.f32 %v779_v4, %v759_v5 }
 0x2ca   : > { %v781_v8 = vpop.f32.mrf.mxu2  ;;  %v801_v9 = vpop.f32.mrf.mxu3 }
 0x2cb   : > { %v805_v10 = vadd.f32 %v801_v9, %v783_v6 }
 0x2cd   : > { %v810_v12 = vadd.f32 %v1145_v7, %v805_v10 }
 0x2cf   : > { %v812_v13 = vadd.f32 %v811_v11, %v810_v12 }
 0x2d1   : > { %v814_v14 = vsel %vm813_vm1, %v812_v13, 0.0 }
 0x2d2   : > { %v803_v15 = vpop.f32.mrf.mxu3  ;;  %815 = vadd.xlane.f32.xlu2 %v814_v14 }
 0x345   : > { %v816_v23 = vpop.xlane.xlu2 %815 }
 0x346   : > { %v824_v24 = vmul.f32 %v823_v22, %v816_v23 }
 0x348   : > { %v825_v25 = vsub.f32 %v812_v13, %v824_v24 }
 0x34a   : > { %v826_v26 = vmul.f32 %v825_v25, %v825_v25 }
 0x34c   : > { %v827_v27 = vsel %vm813_vm1, %v826_v26, 0.0 }
 0x34d   : > { %828 = vadd.xlane.f32.xlu0 %v827_v27 }
 0x34e   : > { %1195 = shalt.err (!%p1192_p5)
}
 0x34f   : > { %s1281_s26 = smov 128   ;;  %s1282_s23 = smov 8   ;;  %v1146_v37 = vld [vmem:[%s1557_s6] ss:$0 sm:$0xff] }
 0x350   : > { %1083 = dma.vmem_to_hbm [thread:$0]  (%p1373_p4), %s889_s28, 512, %s891_s29, %s860_s15, %s1281_s26, %s1281_s26, %s1282_s23  }
 0x351   : > { %s1047_s0 = sshll.u32 %s1440_s24, 3  ;;  %s1073_s1 = sshll.u32 %s1270_s12, 3  ;;  %v1147_v40 = vld [vmem:[%s1558_s7] ss:$0 sm:$0xff] }
 0x352   : > { %s871_s25 = scalar_lea.hbm %s1559_s8, %s1073_s1  ;;  %s404_s12 = scalar_lea.vmem [#allocation2], %s1047_s0 }
 0x353   : > { %s873_s29 = sshll.u32 %s404_s12, 4  ;;  %s875_s15 = sshll.u32 %s871_s25, 4  ;;  %s874_s29 = int_to_ptr.vmem [resolvable:$true] %s873_s29  ;;  %s876_s15 = int_to_ptr.hbm [resolvable:$true] %s875_s15 }
 0x354   : > { %s855_s16 = scalar_lea.sflag [#allocation3], %s1440_s24  ;;  %s1210_s18 = sshra.s32 %s876_s15, 4  ;;  %s1211_s18 = int_to_ptr.hbm [resolvable:$true] %s1210_s18 }
 0x355   : > { %s1212_s26 = scalar_lea.hbm %s1211_s18, 8  ;;  %s1216_s0 = scalar_lea.hbm %s1559_s8, 16 }
 0x356   : > { %p1213_p6 = scmp.ne.s32.totalorder %s1211_s18, %s1212_s26  ;;  %p1217_p10 = scmp.lt.s32.totalorder %s1211_s18, %s1559_s8 }
 0x357   : > { %p1218_p11 = scmp.lt.s32.totalorder %s1216_s0, %s1212_s26 }
 0x358   : > { %p1214_p7 = pnand %p1213_p6, %p1373_p4 }
 0x359   : > { %p1219_p12 = por %p1218_p11, %p1217_p10 }
 0x35a   : > { %p1215_p9 = pneg %p1214_p7 }
 0x35c   : > { %p1220_p13 = pnand %p1219_p12, %p1215_p9 }
 0x3c0   : > { %v829_v28 = vpop.xlane.xlu0 %828 }
 0x3c1   : > { %v830_v29 = vmul.f32 %v829_v28, %v823_v22 }
 0x3c3   : > { %v831_v30 = vadd.f32 1e-05, %v830_v29 }
 0x3c5   : > { %1166 = vrsqrt.f32 %v831_v30  ;;  %vm838_vm6 = vweird.f32 %v831_v30 }
 0x3cb   : > { %v1167_v31 = vpop.eup %1166 }
 0x3cc   : > { %v833_v32 = vmul.f32 %v1167_v31, %v831_v30  ;;  %vm839_vm5 = vweird.f32 %v1167_v31 }
 0x3cd   : > { %vm840_vm7 = vmor %vm838_vm6, %vm839_vm5 }
 0x3ce   : > { %v834_v33 = vmul.f32 %v1167_v31, %v833_v32 }
 0x3d0   : > { %v835_v34 = vmul.f32 0.5, %v834_v33 }
 0x3d2   : > { %v836_v35 = vsub.f32 1.5, %v835_v34 }
 0x3d4   : > { %v837_v36 = vmul.f32 %v1167_v31, %v836_v35 }
 0x3d6   : > { %v841_v38 = vsel %vm840_vm7, %v1167_v31, %v837_v36 }
 0x3d7   : > { %v842_v39 = vmul.f32 %v841_v38, %v825_v25 }
 0x3d9   : > { %v847_v41 = vmul.f32 %v1146_v37, %v842_v39 }
 0x3db   : > { %v852_v42 = vadd.f32 %v1147_v40, %v847_v41 }
 0x3dd   : > { %853 = vst.msk [vmem:[%s404_s12] sm:$0xff] %vm813_vm1, %v852_v42 }
 0x3de   : > { %1223 = shalt.err (!%p1220_p13)
}
 0x3df   : > { %1082 = dma.vmem_to_hbm [thread:$0]  (%p1373_p4), %s874_s29, 128, %s876_s15, %s855_s16  }
 0x3e0 PF: > { %p1093_p0 = scmp.ge.s32.totalorder %s1278_s14, 2  ;;  %s905_s24 = sand.u32 1, %s1258_s30  }
 0x3e1   : > { %s906_s4 = scalar_lea.sflag [#allocation3], %s905_s24 }
 0x3e2   : > { %p1087_p1 = pnand %p1093_p0, %p1380_p8 }
 0x3e4   : > { %p1088_p2 = pneg %p1087_p1 }
 0x3e6   : > { %1249 = dma.done.wait (%p1088_p2), %s906_s4, 128  }
 0x3e7   : > { %1251 = vsyncadd (%p1088_p2), %s906_s4, 4294967168  ;;  %s916_s20 = scalar_lea.sflag [#allocation5], %s905_s24 }
 0x3e8   : > { %1253 = dma.done.wait (%p1088_p2), %s916_s20, 512  }
 0x3e9   : > { %1255 = vsyncadd (%p1088_p2), %s916_s20, 4294966784  ;;  %s26_s14 = sadd.s32 1, %s1278_s14   ;;  %s1573_s30 = smov %s1262_s10 }
 0x3ea   : > { %p23_p3 = scmp.ge.s32.totalorder %s26_s14, 4   ;;  %s1574_s10 = smov %s1266_s11 }
 0x3eb   : > { %s1575_s11 = smov %s1386_s22  ;;  %s1576_s12 = smov %s1274_s13 }
 0x3ec   : > { %s1577_s13 = smov %s1579_s17  ;;  %25 = sbr.rel (!%p23_p3) target bundleno = 12 (0xc), region = 116 }
 0x3f1   :  { %922 = vsyncpa [#allocation3], 1 }
 0x3f2   :  { %924 = vsyncpa [#allocation3 + $0x1], 1 }
 0x3f3   :  { %925 = vsyncpa [#allocation5], 1 }
 0x3f4   :  { %927 = vsyncpa [#allocation5 + $0x1], 1 }

// kernel: quantum_attention.2
= control target key start
LH: loop header
LB: loop body
LE: loop exit
PB: predicated region body
PF: predicated region fallthrough
CT: control target
= control target key end

     0   :  { %s974_s21 = smov 0   ;;  %s976_s22 = smov 0   ;;  %s1124_s0 = inlined_call_operand.vmem [shape: bf16[2,8,32], index: 0, kind: input, shape index: {}]   ;;  %s1125_s1 = inlined_call_operand.vmem [shape: bf16[32,224], index: 1, kind: input, shape index: {}]   ;;  %s1126_s2 = inlined_call_operand.vmem [shape: f32[1,224], index: 2, kind: input, shape index: {}]   ;;  %s1127_s3 = inlined_call_operand.vmem [shape: bf16[2,16,32], index: 3, kind: input, shape index: {}]   ;;  %s1128_s4 = inlined_call_operand.vmem [shape: bf16[2,4,8,24], index: 4, kind: output, shape index: {0}]   ;;  %s1129_s5 = inlined_call_operand.vmem [shape: bf16[2,4,8,24], index: 5, kind: output, shape index: {1}]   ;;  %s1130_s6 = inlined_call_operand.vmem [shape: bf16[2,4,8,8], index: 6, kind: output, shape index: {2}]  }
   0x1   :  { %s978_s23 = smov 0  }
   0x2 LB: > { %s29_s24 = sadd.s32 1, %s920_s22  ;;  %p785_p0 = scmp.ge.s32.totalorder %s924_s23, 1  ;;  %s924_s23 = sphi %s978_s23, %s17_s23   ;;  %s920_s22 = sphi %s976_s22, %s1132_s22   ;;  %s916_s21 = sphi %s974_s21, %s1131_s21  }
   0x3   : > { %p31_p1 = scmp.ge.s32.totalorder %s29_s24, 2  ;;  %p239_p2 = scmp.lt.s32.totalorder %s924_s23, 3 }
   0x5   : > { %s1134_s24 = smov (%p31_p1, %s29_s24), 0  ;;  %p240_p3 = pnand %p785_p0, %p239_p2 }
   0x6   : > { %p290_p4 = scmp.lt.s32.totalorder (!%p240_p3), %s916_s21, 1  ;;  %s926_s15 = smov (!%p240_p3), 112  }
   0x7   : > { %243 = sbr.rel (%p240_p3) target bundleno = 820 (0x334), region = 36  ;;  %s927_s16 = smov (!%p240_p3), 64  }
   0x8   : > { %s928_s17 = smov (!%p240_p3), 96   ;;  %s929_s18 = smov (!%p240_p3), 104  }
   0x9   : > { %s931_s11 = smov (!%p240_p3), 32   ;;  %s933_s26 = smov (!%p240_p3), 88  }
   0xa   : > { %s934_s27 = smov (!%p240_p3), 48   ;;  %s935_s28 = smov (!%p240_p3), 120  }
   0xb   : > { %s936_s29 = smov (!%p240_p3), 40   ;;  %s938_s30 = smov (!%p240_p3), 56  }
   0xc   : > { %v847_v0 = vld [vmem:[%s1125_s1 + $0x14] sm:$0xf]  ;;  %v805_v1 = vld [vmem:[%s1125_s1 + $0x18] sm:$0xf0]  ;;  %v845_v2 = vld [vmem:[%s1125_s1 + $0x4] sm:$0xf] }
   0xd   : > { %v808_v3 = vor.u32 %v847_v0, %v805_v1  ;;  %v797_v4 = vld [vmem:[%s1125_s1 + $0x8] sm:$0xf0]  ;;  %s1136_s21 = smov (!%p290_p4, %s916_s21), 1  ;;  %vm353_vm0 = vcmask 261120   ;;  %v327_v7 = vld [vmem:[%s1126_s2] sm:$0x3] }
   0xe   : > { %v800_v5 = vor.u32 %v845_v2, %v797_v4  ;;  %s786_s9 = sshll.u32 %s1136_s21, 2  ;;  %v330_v8 = vperm.slane %v327_v7, 1  ;;  %v849_v18 = vld [vmem:[%s1127_s3] sm:$0xff]  ;;  %v850_v19 = vld [vmem:[%s1127_s3 + $0x8] sm:$0xff]  ;;  %v803_v20 = vld [vmem:[%s1125_s1 + $0x10] sm:$0xf] }
   0xf   : > { %376 = vmatpush.bf16.msra.mxu1 %v808_v3  ;;  %s296_s12 = scalar_lea.vmem %s1124_s0, %s786_s9  ;;  %414 = vmatpush.bf16.msra.mxu2 %v849_v18  ;;  %v848_v21 = vld [vmem:[%s1125_s1 + $0x14] sm:$0xf0]  ;;  %vm403_vm1 = vcmask 130048   ;;  %v795_v25 = vld [vmem:[%s1125_s1] sm:$0xf]  ;;  %v930_v32 = vmov 16.0  }
  0x10   : > { %v322_v6 = vld [vmem:[%s296_s12] sm:$0xf]  ;;  %441 = vmatpush.bf16.msra.mxu3 %v850_v19  ;;  %v804_v22 = vor.u32 %v848_v21, %v803_v20  ;;  %v846_v26 = vld [vmem:[%s1125_s1 + $0x4] sm:$0xf0]  ;;  %888 = vrcp.f32 %v930_v32  ;;  %v329_v43 = vperm.slane %v327_v7, 0  ;;  %s932_s12 = smov 72  }
  0x11   : > { %v796_v27 = vor.u32 %v846_v26, %v795_v25  ;;  %s1058_s13 = sshll.u32 %s1136_s21, 4  ;;  %vm531_vm11 = vcmask 60416   ;;  %vm537_vm12 = vcmask 191552  }
  0x12   : > { %363 = vmatpush.bf16.msra.mxu0 %v804_v22  ;;  %s1064_s19 = scalar_lea.vmem %s1130_s6, %s1058_s13  ;;  %s1073_s25 = scalar_lea.vmem %s1128_s4, %s1058_s13 }
  0x13   : > { %377 = vmatpush.bf16.msra.mxu1 %v800_v5 }
  0x16   : > { %810 = vmatmul.msk.bf16.vlgmr.msra.gmra.mxu1 %vm353_vm0, %v322_v6  ;;  %364 = vmatpush.bf16.msra.mxu0 %v796_v27  ;;  %v889_v33 = vpop.eup %888 }
  0x17   : > { %v455_v34 = vmul.f32 16.0, %v889_v33  ;;  %vm459_vm2 = vweird.f32 %v889_v33 }
  0x19   : > { %809 = vmatmul.msk.bf16.vlgmr.msra.gmra.mxu0 %vm353_vm0, %v322_v6  ;;  %v456_v35 = vsub.f32 1.0, %v455_v34 }
  0x1b   : > { %v457_v36 = vmul.f32 %v889_v33, %v456_v35 }
  0x1d   : > { %v458_v37 = vadd.f32 %v889_v33, %v457_v36 }
  0x1f   : > { %v460_v38 = vsel %vm459_vm2, %v889_v33, %v458_v37 }
  0x93   : > { %v379_v9 = vpop.f32.mrf.mxu1 }
  0x94   : > { %v1014_v10 = vadd.f32 %v379_v9, %v330_v8 }
  0x96   : > { %v385_v11 = vmul.f32 %v1014_v10, %v1014_v10  ;;  %v366_v42 = vpop.f32.mrf.mxu0 }
  0x97   : > { %v1046_v45 = vadd.f32 %v366_v42, %v329_v43 }
  0x98   : > { %387 = vrot.lane.b32.xlu0 %v385_v11, %s926_s15 }
  0x99   : > { %v1050_v47 = vpack.c.bf16 %v1046_v45, %v1046_v45 }
  0x9b   : > { %v381_v12 = vpop.f32.mrf.mxu1 }
  0x9e   : > { %v368_v44 = vpop.f32.mrf.mxu0 }
 0x10a   : > { %v388_v13 = vpop.permute.xlu0 %387 }
 0x10b   : > { %v390_v14 = vadd.f32 %v388_v13, %v385_v11 }
 0x10d   : > { %481 = vrot.lane.b32.xlu2 %v390_v14, %s927_s16  ;;  %v391_v15 = vpack.c.bf16 %v390_v14, %v390_v14  ;;  %v528_v16 = vmul.f32 0.5318296, %v390_v14 }
 0x10f   : > { %395 = vrot.lane.b32.xlu1 %v391_v15, %s928_s17  ;;  %423 = vrot.lane.b32.xlu0 %v391_v15, %s927_s16  ;;  %v1023_v17 = vpack.c.bf16 %v528_v16, %v528_v16 }
 0x117   : > { %448 = vrot.lane.b32.xlu1 %v390_v14, %s928_s17 }
 0x11f   : > { %534 = vrot.lane.b32.xlu1 %v1023_v17, %s929_s18 }
 0x167   : > { %v482_v23 = vpop.permute.xlu2 %481 }
 0x168   : > { %v484_v24 = vsel %vm403_vm1, %v482_v23, 0.0 }
 0x169   : > { %485 = vadd.xlane.f32.xlu0 %v484_v24 }
 0x181   : > { %v396_v28 = vpop.permute.xlu1 %395  ;;  %v424_v29 = vpop.permute.xlu0 %423 }
 0x182   : > { %815 = vmatmul.msk.bf16.vlgmr.msra.gmra.mxu2 %vm403_vm1, %v396_v28  ;;  %822 = vmatmul.msk.bf16.vlgmr.msra.gmra.mxu3 %vm403_vm1, %v424_v29 }
 0x189   : > { %v449_v30 = vpop.permute.xlu1 %448 }
 0x18a   : > { %v451_v31 = vsel %vm403_vm1, %v449_v30, 0.0 }
 0x18b   : > { %452 = vadd.xlane.f32.xlu2 %v451_v31 }
 0x191   : > { %v535_v26 = vpop.permute.xlu1 %534 }
 0x1a3   : > { %551 = vrot.lane.b32.xlu2 %v1050_v47, %s927_s16 }
 0x1dc   : > { %v486_v39 = vpop.xlane.xlu0 %485 }
 0x1dd   : > { %v487_v40 = vmul.f32 %v486_v39, %v460_v38 }
 0x1df   : > { %v824_v41 = vmul.f32 -1.442695, %v487_v40 }
 0x1e1   : > { %890 = vpow2.f32 %v824_v41 }
 0x1e7   : > { %v891_v46 = vpop.eup %890 }
 0x1e8   : > { %v491_v48 = vadd.f32 1.0, %v891_v46 }
 0x1ea   : > { %892 = vrcp.f32 %v491_v48  ;;  %v503_v1 = vand.u32 2147483648, %v491_v48  ;;  %vm497_vm4 = vweird.f32 %v491_v48  ;;  %v501_v3 = vand.u32 2147483647, %v491_v48 }
 0x1ec   : > { %v504_v8 = vor.u32 1.1754944e-38, %v503_v1  ;;  %vm502_vm8 = vcmp.eq.f32.partialorder %v501_v3, 8.507059e+37 }
 0x1f0   : > { %v893_v52 = vpop.eup %892 }
 0x1f1   : > { %v493_v55 = vmul.f32 %v893_v52, %v491_v48  ;;  %vm498_vm3 = vweird.f32 %v893_v52 }
 0x1f2   : > { %vm499_vm5 = vmor %vm497_vm4, %vm498_vm3 }
 0x1f3   : > { %v494_v58 = vsub.f32 1.0, %v493_v55 }
 0x1f5   : > { %v495_v61 = vmul.f32 %v893_v52, %v494_v58 }
 0x1f7   : > { %v496_v0 = vadd.f32 %v893_v52, %v495_v61 }
 0x1f9   : > { %v500_v7 = vsel %vm499_vm5, %v893_v52, %v496_v0 }
 0x1fa   : > { %v505_v12 = vsel %vm502_vm8, %v504_v8, %v500_v7 }
 0x1fb   : > { %v516_v19 = vsub.f32 1.0, %v505_v12 }
 0x1fe   : > { %v453_v49 = vpop.xlane.xlu2 %452 }
 0x1ff   : > { %v461_v50 = vmul.f32 %v460_v38, %v453_v49 }
 0x201   : > { %v823_v51 = vmul.f32 -1.442695, %v461_v50 }
 0x203   : > { %894 = vpow2.f32 %v823_v51 }
 0x205   : > { %v416_v53 = vpop.f32.mrf.mxu2  ;;  %v443_v54 = vpop.f32.mrf.mxu3 }
 0x206   : > { %v515_v20 = vmul.f32 %v505_v12, %v443_v54 }
 0x209   : > { %v895_v56 = vpop.eup %894 }
 0x20a   : > { %v465_v57 = vadd.f32 1.0, %v895_v56 }
 0x20c   : > { %896 = vrcp.f32 %v465_v57  ;;  %v477_v4 = vand.u32 2147483648, %v465_v57  ;;  %v475_v6 = vand.u32 2147483647, %v465_v57  ;;  %vm471_vm7 = vweird.f32 %v465_v57 }
 0x20d   : > { %v418_v59 = vpop.f32.mrf.mxu2  ;;  %v445_v60 = vpop.f32.mrf.mxu3  ;;  %898 = vtanh.f32 %v1046_v45 }
 0x20e   : > { %900 = vtanh.f32 %v1014_v10  ;;  %v478_v11 = vor.u32 1.1754944e-38, %v477_v4  ;;  %vm476_vm10 = vcmp.eq.f32.partialorder %v475_v6, 8.507059e+37  ;;  %v552_v10 = vpop.permute.xlu2 %551 }
 0x20f   : > { %554 = vst.msk [vmem:[%s1064_s19] sm:$0xf] %vm531_vm11, %v552_v10 }
 0x212   : > { %v897_v62 = vpop.eup %896 }
 0x213   : > { %v467_v63 = vmul.f32 %v897_v62, %v465_v57  ;;  %vm472_vm6 = vweird.f32 %v897_v62  ;;  %v899_v14 = vpop.eup %898 }
 0x214   : > { %vm473_vm9 = vmor %vm471_vm7, %vm472_vm6  ;;  %v901_v22 = vpop.eup %900 }
 0x215   : > { %v468_v2 = vsub.f32 1.0, %v467_v63  ;;  %v517_v23 = vmul.f32 %v901_v22, %v516_v19 }
 0x217   : > { %v469_v5 = vmul.f32 %v897_v62, %v468_v2  ;;  %v518_v24 = vadd.f32 %v517_v23, %v515_v20 }
 0x219   : > { %v470_v9 = vadd.f32 %v897_v62, %v469_v5  ;;  %v522_v25 = vmul.f32 0.3, %v518_v24 }
 0x21b   : > { %v474_v13 = vsel %vm473_vm9, %v897_v62, %v470_v9 }
 0x21c   : > { %v479_v15 = vsel %vm476_vm10, %v478_v11, %v474_v13 }
 0x21d   : > { %v507_v16 = vmul.f32 %v479_v15, %v416_v53  ;;  %v508_v18 = vsub.f32 1.0, %v479_v15 }
 0x21f   : > { %v509_v21 = vmul.f32 %v899_v14, %v508_v18 }
 0x221   : > { %511 = vrot.lane.b32.xlu1 %v509_v21, %s931_s11 }
 0x229   : > { %524 = vrot.lane.b32.xlu1 %v522_v25, %s931_s11 }
 0x231   : > { %545 = vrot.lane.b32.xlu1 %v1023_v17, %s932_s12  ;;  %v519_v17 = vmul.f32 0.7, %v1046_v45 }
 0x293   : > { %v512_v27 = vpop.permute.xlu1 %511 }
 0x294   : > { %v514_v28 = vadd.f32 %v512_v27, %v507_v16 }
 0x296   : > { %v520_v29 = vmul.f32 0.3, %v514_v28 }
 0x298   : > { %v521_v30 = vadd.f32 %v520_v29, %v519_v17 }
 0x29a   : > { %v530_v31 = vpack.c.bf16 %v521_v30, %v521_v30 }
 0x29b   : > { %v525_v32 = vpop.permute.xlu1 %524 }
 0x29c   : > { %532 = vst.msk [vmem:[%s1073_s25] sm:$0xf] %vm531_vm11, %v530_v31  ;;  %v527_v33 = vadd.f32 %v525_v32, %v519_v17  ;;  %590 = vrot.lane.b32.xlu2 %v530_v31, %s929_s18  ;;  %s937_s18 = smov 80  }
 0x29d   : > { %538 = vst.msk [vmem:[%s1073_s25] sm:$0xf] %vm537_vm12, %v535_v26 }
 0x29e   : > { %v539_v34 = vpack.c.bf16 %v527_v33, %v527_v33 }
 0x2a0   : > { %562 = vrot.lane.b32.xlu0 %v539_v34, %s933_s26  ;;  %541 = vrot.lane.b32.xlu1 %v539_v34, %s928_s17 }
 0x2a3   : > { %v546_v37 = vpop.permute.xlu1 %545 }
 0x2a4   : > { %585 = vrot.lane.b32.xlu2 %v1050_v47, %s934_s27 }
 0x2a8   : > { %596 = vrot.lane.b32.xlu0 %v539_v34, %s932_s12  ;;  %556 = vrot.lane.b32.xlu1 %v530_v31, %s935_s28 }
 0x2b0   : > { %602 = vrot.lane.b32.xlu0 %v1050_v47, %s936_s29  ;;  %573 = vrot.lane.b32.xlu1 %v530_v31, %s926_s15  ;;  %s312_s15 = scalar_lea.vmem %s1129_s5, %s1058_s13 }
 0x2b8   : > { %579 = vrot.lane.b32.xlu1 %v539_v34, %s937_s18 }
 0x2c0   : > { %568 = vrot.lane.b32.xlu1 %v1050_v47, %s938_s30 }
 0x2f6   : > { %v591_v35 = vpop.permute.xlu2 %590 }
 0x2f7   : > { %835 = vst.msk [vmem:[%s1073_s25 + $0xc] sm:$0xf] %vm531_vm11, %v591_v35 }
 0x2f8   : > { %836 = vst.msk [vmem:[%s1073_s25 + $0xc] sm:$0xf] %vm537_vm12, %v535_v26 }
 0x2fe   : > { %v586_v36 = vpop.permute.xlu2 %585 }
 0x2ff   : > { %834 = vst.msk [vmem:[%s1064_s19 + $0x8] sm:$0xf] %vm531_vm11, %v586_v36 }
 0x312   : > { %v563_v38 = vpop.permute.xlu0 %562  ;;  %v542_v39 = vpop.permute.xlu1 %541 }
 0x313   : > { %827 = vst.msk [vmem:[%s312_s15 + $0x4] sm:$0xf] %vm531_vm11, %v563_v38 }
 0x314   : > { %828 = vst.msk [vmem:[%s312_s15 + $0x4] sm:$0xf] %vm537_vm12, %v546_v37 }
 0x315   : > { %544 = vst.msk [vmem:[%s312_s15] sm:$0xf] %vm531_vm11, %v542_v39 }
 0x316   : > { %548 = vst.msk [vmem:[%s312_s15] sm:$0xf] %vm537_vm12, %v546_v37 }
 0x31a   : > { %v597_v40 = vpop.permute.xlu0 %596  ;;  %v557_v41 = vpop.permute.xlu1 %556 }
 0x31b   : > { %837 = vst.msk [vmem:[%s312_s15 + $0xc] sm:$0xf] %vm531_vm11, %v597_v40 }
 0x31c   : > { %838 = vst.msk [vmem:[%s312_s15 + $0xc] sm:$0xf] %vm537_vm12, %v546_v37 }
 0x31d   : > { %825 = vst.msk [vmem:[%s1073_s25 + $0x4] sm:$0xf] %vm531_vm11, %v557_v41 }
 0x31e   : > { %826 = vst.msk [vmem:[%s1073_s25 + $0x4] sm:$0xf] %vm537_vm12, %v535_v26 }
 0x322   : > { %v603_v42 = vpop.permute.xlu0 %602  ;;  %v574_v43 = vpop.permute.xlu1 %573 }
 0x323   : > { %839 = vst.msk [vmem:[%s1064_s19 + $0xc] sm:$0xf] %vm531_vm11, %v603_v42 }
 0x324   : > { %830 = vst.msk [vmem:[%s1073_s25 + $0x8] sm:$0xf] %vm531_vm11, %v574_v43 }
 0x325   : > { %831 = vst.msk [vmem:[%s1073_s25 + $0x8] sm:$0xf] %vm537_vm12, %v535_v26 }
 0x32a   : > { %v580_v44 = vpop.permute.xlu1 %579 }
 0x32b   : > { %832 = vst.msk [vmem:[%s312_s15 + $0x8] sm:$0xf] %vm531_vm11, %v580_v44 }
 0x32c   : > { %833 = vst.msk [vmem:[%s312_s15 + $0x8] sm:$0xf] %vm537_vm12, %v546_v37 }
 0x332   : > { %v569_v45 = vpop.permute.xlu1 %568 }
 0x333   : > { %829 = vst.msk [vmem:[%s1064_s19 + $0x4] sm:$0xf] %vm531_vm11, %v569_v45 }
 0x334 PF: > { %s17_s23 = sadd.s32 1, %s924_s23   ;;  %s1131_s21 = smov %s920_s22 }
 0x335   : > { %p14_p5 = scmp.ge.s32.totalorder %s17_s23, 4   ;;  %s1132_s22 = smov %s1134_s24 }
 0x337   :  { %16 = sbr.rel (!%p14_p5) target bundleno = 2 (0x2), region = 100 }

</bundles_post_ra>
